<compile_context>
chip_gen: v6e
topology: v6e:2x2x1
jax: 0.10.0
libtpu: 0.0.40
codegen_flags: <defaults>
</compile_context>

<pallas_src>
import jax
import jax.numpy as jnp
from jax.experimental import pallas as pl
from jax.experimental.pallas import tpu as pltpu


def _round_up(n, m):
    return ((n + m - 1) // m) * m


def _softplus(y):
    # numerically stable softplus in f32 (identical to jax.nn.softplus)
    return jnp.maximum(y, 0.0) + jnp.log1p(jnp.exp(-jnp.abs(y)))


# --------------------------------------------------------------------------------------
# Kernels
# --------------------------------------------------------------------------------------
def _fused_mlp_kernel(x_ref, w1_ref, b1_ref, w2_ref, b2_ref, w3_ref, b3_ref, o_ref):
    """One batch-row tile through all three layers; all weights VMEM-resident.

    bf16 x bf16 dots on the MXU with f32 accumulation; softplus in f32; activations
    downcast to bf16 between layers.
    """
    h = jnp.dot(x_ref[...], w1_ref[...], preferred_element_type=jnp.float32) + b1_ref[...]
    h = _softplus(h).astype(w2_ref.dtype)
    h = jnp.dot(h, w2_ref[...], preferred_element_type=jnp.float32) + b2_ref[...]
    h = _softplus(h).astype(w3_ref.dtype)
    o = jnp.dot(h, w3_ref[...], preferred_element_type=jnp.float32) + b3_ref[...]
    o_ref[...] = o.astype(o_ref.dtype)


def _streamed_mlp_kernel(x_ref, w1_ref, b1_ref, w2_ref, b2_ref, w3_ref, b3_ref,
                         o_ref, acc_ref):
    """W1 is streamed over the K grid axis (layer-1 partial sums in an f32 scratch);
    layers 2/3 stay fused and VMEM-resident and run on the last K step only."""
    k = pl.program_id(1)

    @pl.when(k == 0)
    def _init():
        acc_ref[...] = jnp.zeros_like(acc_ref)

    acc_ref[...] += jnp.dot(x_ref[...], w1_ref[...], preferred_element_type=jnp.float32)

    @pl.when(k == pl.num_programs(1) - 1)
    def _finalize():
        h = _softplus(acc_ref[...] + b1_ref[...]).astype(w2_ref.dtype)
        h = jnp.dot(h, w2_ref[...], preferred_element_type=jnp.float32) + b2_ref[...]
        h = _softplus(h).astype(w3_ref.dtype)
        o = jnp.dot(h, w3_ref[...], preferred_element_type=jnp.float32) + b3_ref[...]
        o_ref[...] = o.astype(o_ref.dtype)


# --------------------------------------------------------------------------------------
# Wrapper
# --------------------------------------------------------------------------------------
def _vmem_limit_bytes():
    """Generation-aware scoped-VMEM limit (with headroom): ~96 MiB on 128 MiB parts
    (v5e/v6e), ~48 MiB on v7x (64 MiB/TC)."""
    cap = 64 * 1024 * 1024
    try:
        info = pltpu.get_tpu_info()
        cap = int(getattr(info, "vmem_capacity_bytes", cap))
    except Exception:
        pass
    return (cap * 3) // 4


def _choose_tm(M, tm_cap):
    """Row tile: big enough to fill the 256-wide MXU when batch allows, >= 2 tiles so
    both v7x TensorCores get work, always sublane (8) aligned, capped for VMEM."""
    if M >= 2 * tm_cap:
        return tm_cap
    if M <= 8:
        return _round_up(M, 8)
    return min(tm_cap, _round_up(pl.cdiv(M, 2), 8))


def _const_spec(shape, n_grid_axes, single_buffer):
    """Grid-invariant (DMA-once) BlockSpec for weights/biases."""
    idx = (lambda i: (0, 0)) if n_grid_axes == 1 else (lambda i, k: (0, 0))
    if single_buffer:
        return pl.BlockSpec(shape, idx, pipeline_mode=pl.Buffered(1))
    return pl.BlockSpec(shape, idx)


def mlp_forward(x, params, *, tm_cap=256, tk_stream=512, force_stream=False):
    """Reproduces MLP.forward: Linear -> Softplus -> Linear -> Softplus -> Linear."""
    w1t, b1 = params["w1t"], params["b1"]
    w2t, b2 = params["w2t"], params["b2"]
    w3t, b3 = params["w3t"], params["b3"]
    n_class = params["n_class"]

    M, K_in = x.shape
    K_pad, H1 = w1t.shape
    H1b, H2 = w2t.shape
    H2b, Np = w3t.shape
    assert K_in <= K_pad and H1 == H1b and H2 == H2b and b3.shape == (1, Np)

    # Input layout: bf16 (halves the x DMA stream, required for the bf16 MXU path),
    # lane-aligned K, zero-padded batch so any batch size works.
    x = x.astype(w1t.dtype)
    if K_in < K_pad:
        x = jnp.pad(x, ((0, 0), (0, K_pad - K_in)))
    tm = _choose_tm(M, tm_cap)
    M_pad = _round_up(M, tm)
    if M_pad > M:
        x = jnp.pad(x, ((0, M_pad - M), (0, 0)))

    limit = _vmem_limit_bytes()
    w_bytes = sum(int(a.size) * a.dtype.itemsize for a in (w1t, w2t, w3t, b1, b2, b3))
    fused_bytes = (w_bytes                                  # single-buffered weights/biases
                   + 2 * tm * K_pad * x.dtype.itemsize      # double-buffered x tile
                   + 2 * tm * Np * 4                        # double-buffered output tile
                   + 4 * tm * (H1 + H2 + Np))               # f32 intermediates
    use_stream = bool(force_stream) or fused_bytes > limit

    compiler_params = pltpu.CompilerParams(
        dimension_semantics=("parallel", "arbitrary") if use_stream else ("parallel",),
        vmem_limit_bytes=limit,
    )

    def run(single_buffer):
        if not use_stream:
            # ---- fully fused, all weights VMEM-resident ----
            in_specs = [
                pl.BlockSpec((tm, K_pad), lambda i: (i, 0)),       # x rows (per batch tile)
                _const_spec((K_pad, H1), 1, single_buffer),        # weights/biases DMA'd once
                _const_spec((1, H1), 1, single_buffer),
                _const_spec((H1, H2), 1, single_buffer),
                _const_spec((1, H2), 1, single_buffer),
                _const_spec((H2, Np), 1, single_buffer),
                _const_spec((1, Np), 1, single_buffer),
            ]
            return pl.pallas_call(
                _fused_mlp_kernel,
                out_shape=jax.ShapeDtypeStruct((M_pad, Np), jnp.float32),
                grid=(M_pad // tm,),
                in_specs=in_specs,
                out_specs=pl.BlockSpec((tm, Np), lambda i: (i, 0)),
                compiler_params=compiler_params,
            )(x, w1t, b1, w2t, b2, w3t, b3)

        # ---- W1 streamed over K; layers 2/3 fused & resident ----
        tk = tk_stream if (tk_stream <= K_pad and K_pad % tk_stream == 0) else 128
        stream_bytes = (sum(int(a.size) * a.dtype.itemsize
                            for a in (w2t, w3t, b1, b2, b3))       # resident small weights
                        + 2 * tk * H1 * w1t.dtype.itemsize         # streamed W1 tile (2-buf)
                        + 2 * tm * tk * x.dtype.itemsize           # x tile (2-buf)
                        + 2 * tm * Np * 4                          # output tile (2-buf)
                        + 4 * tm * H1                              # f32 accumulator scratch
                        + 4 * tm * (H2 + Np))                      # f32 intermediates
        if stream_bytes > limit:
            raise ValueError(
                f"MLP too large even for the W1-streaming kernel at tm={tm}, tk={tk} "
                f"(~{stream_bytes} B needed, VMEM limit {limit} B)")
        in_specs = [
            pl.BlockSpec((tm, tk), lambda i, k: (i, k)),           # x tile
            pl.BlockSpec((tk, H1), lambda i, k: (k, 0)),           # W1 streamed over K
            _const_spec((1, H1), 2, single_buffer),
            _const_spec((H1, H2), 2, single_buffer),
            _const_spec((1, H2), 2, single_buffer),
            _const_spec((H2, Np), 2, single_buffer),
            _const_spec((1, Np), 2, single_buffer),
        ]
        return pl.pallas_call(
            _streamed_mlp_kernel,
            out_shape=jax.ShapeDtypeStruct((M_pad, Np), jnp.float32),
            grid=(M_pad // tm, K_pad // tk),
            in_specs=in_specs,
            out_specs=pl.BlockSpec((tm, Np), lambda i, k: (i, 0)),
            scratch_shapes=[pltpu.VMEM((tm, H1), jnp.float32)],
            compiler_params=compiler_params,
        )(x, w1t, b1, w2t, b2, w3t, b3)

    try:
        out = run(single_buffer=True)
    except Exception:
        # pl.Buffered(1) not supported on this jax/libtpu build: fall back to the
        # default double-buffered pipeline (correct, just uses more VMEM).
        out = run(single_buffer=False)

    # Drop batch padding and the lane-padding columns of the final layer.
    return out[:M, :n_class]


# --------------------------------------------------------------------------------------
# Params (one-time layout work so the per-forward path does zero reshaping)
# --------------------------------------------------------------------------------------
def init_mlp_params(key, num_genes=27985, hidden1=2048, hidden2=512, n_class=177,
                    weight_dtype=jnp.bfloat16):
    """Deterministic synthetic params, PyTorch nn.Linear semantics (y = x @ W.T + b).
    Weights stored pre-transposed as (in,out) bf16; num_genes / n_class zero-padded to
    multiples of 128; biases stored as (1,out) f32."""
    keys = jax.random.split(key, 6)

    def _layer(kw, kb, fan_in, fan_out):
        bound = 1.0 / jnp.sqrt(fan_in)
        w = jax.random.uniform(kw, (fan_out, fan_in), jnp.float32, -bound, bound)
        b = jax.random.uniform(kb, (fan_out,), jnp.float32, -bound, bound)
        return w, b

    w1, b1 = _layer(keys[0], keys[1], num_genes, hidden1)
    w2, b2 = _layer(keys[2], keys[3], hidden1, hidden2)
    w3, b3 = _layer(keys[4], keys[5], hidden2, n_class)

    k_pad = _round_up(num_genes, 128)
    n_pad = _round_up(n_class, 128)

    w1t = jnp.zeros((k_pad, hidden1), jnp.float32).at[:num_genes, :].set(w1.T)
    w3t = jnp.zeros((hidden2, n_pad), jnp.float32).at[:, :n_class].set(w3.T)
    b3p = jnp.zeros((1, n_pad), jnp.float32).at[:, :n_class].set(b3.reshape(1, -1))

    return dict(
        w1t=w1t.astype(weight_dtype), b1=b1.reshape(1, -1),
        w2t=w2.T.astype(weight_dtype), b2=b2.reshape(1, -1),
        w3t=w3t.astype(weight_dtype), b3=b3p,
        n_class=n_class, num_genes=num_genes,
    )


# --------------------------------------------------------------------------------------
if __name__ == "__main__":
    # Small shapes consistent with the module: x is (batch, num_genes).
    batch, num_genes, hidden1, hidden2, n_class = 8, 512, 256, 128, 64

    key = jax.random.PRNGKey(0)
    kx, kp = jax.random.split(key)
    x = jax.random.normal(kx, (batch, num_genes), jnp.float32)
    params = init_mlp_params(kp, num_genes, hidden1, hidden2, n_class)

    # Fused (all-weights-resident) path.
    out = jax.block_until_ready(mlp_forward(x, params))
    assert out.shape == (batch, n_class)

    # W1-streaming (K-tiled) path, forced at toy shapes to exercise the full-size codepath.
    out_stream = jax.block_until_ready(
        mlp_forward(x, params, force_stream=True, tk_stream=128))
    assert out_stream.shape == (batch, n_class)

    # Pure-JAX reference mirroring the kernel's dtype flow (bf16 MXU dots, f32 accum,
    # f32 softplus, bf16 activations between layers).
    k_pad = params["w1t"].shape[0]
    xb = x.astype(params["w1t"].dtype)
    if k_pad > num_genes:
        xb = jnp.pad(xb, ((0, 0), (0, k_pad - num_genes)))
    h = jnp.dot(xb, params["w1t"], preferred_element_type=jnp.float32) + params["b1"]
    h = _softplus(h).astype(params["w2t"].dtype)
    h = jnp.dot(h, params["w2t"], preferred_element_type=jnp.float32) + params["b2"]
    h = _softplus(h).astype(params["w3t"].dtype)
    ref = (jnp.dot(h, params["w3t"], preferred_element_type=jnp.float32)
           + params["b3"])[:, :n_class]

    assert jnp.allclose(out, ref, atol=5e-3, rtol=5e-3), float(jnp.abs(out - ref).max())
    assert jnp.allclose(out_stream, ref, atol=5e-3, rtol=5e-3), \
        float(jnp.abs(out_stream - ref).max())

    print("KERNEL_OK")
</pallas_src>

<mosaic_0001>
module attributes {stable_mosaic.version = 11 : i64} {
  func.func @_fused_mlp_kernel(%arg0: i32, %arg1: memref<8x512xbf16, #tpu.memory_space<vmem>>, %arg2: memref<512x256xbf16, #tpu.memory_space<vmem>>, %arg3: memref<1x256xf32, #tpu.memory_space<vmem>>, %arg4: memref<256x128xbf16, #tpu.memory_space<vmem>>, %arg5: memref<1x128xf32, #tpu.memory_space<vmem>>, %arg6: memref<128x128xbf16, #tpu.memory_space<vmem>>, %arg7: memref<1x128xf32, #tpu.memory_space<vmem>>, %arg8: memref<8x128xf32, #tpu.memory_space<vmem>>) attributes {dimension_semantics = [#tpu.dimension_semantics<parallel>], iteration_bounds = array<i64: 1>, scalar_prefetch = 0 : i64, scratch_operands = 0 : i64, tpu.core_type = #tpu.core_type<tc>, window_params = [{transform_indices = @transform_0, window_bounds = array<i64: 8, 512>}, {pipeline_mode = #tpu.pipeline_mode<synchronous>, transform_indices = @transform_1, window_bounds = array<i64: 512, 256>}, {pipeline_mode = #tpu.pipeline_mode<synchronous>, transform_indices = @transform_2, window_bounds = array<i64: 1, 256>}, {pipeline_mode = #tpu.pipeline_mode<synchronous>, transform_indices = @transform_3, window_bounds = array<i64: 256, 128>}, {pipeline_mode = #tpu.pipeline_mode<synchronous>, transform_indices = @transform_4, window_bounds = array<i64: 1, 128>}, {pipeline_mode = #tpu.pipeline_mode<synchronous>, transform_indices = @transform_5, window_bounds = array<i64: 128, 128>}, {pipeline_mode = #tpu.pipeline_mode<synchronous>, transform_indices = @transform_6, window_bounds = array<i64: 1, 128>}, {transform_indices = @transform_7, window_bounds = array<i64: 8, 128>}]} {
    %c0 = arith.constant 0 : index
    %c0_0 = arith.constant 0 : index
    %0 = vector.load %arg1[%c0, %c0_0] : memref<8x512xbf16, #tpu.memory_space<vmem>>, vector<8x512xbf16>
    %c0_1 = arith.constant 0 : index
    %c0_2 = arith.constant 0 : index
    %1 = vector.load %arg2[%c0_1, %c0_2] : memref<512x256xbf16, #tpu.memory_space<vmem>>, vector<512x256xbf16>
    %cst = arith.constant dense<0.000000e+00> : vector<8x256xf32>
    %2 = tpu.matmul %0, %1, %cst {dimension_numbers = #tpu.dot_dimension_numbers<[1], [0], [0], [1], [0, 0, 1, 1], [], []>} : vector<8x512xbf16>, vector<512x256xbf16>, vector<8x256xf32> -> vector<8x256xf32>
    %c0_3 = arith.constant 0 : index
    %c0_4 = arith.constant 0 : index
    %3 = vector.load %arg3[%c0_3, %c0_4] : memref<1x256xf32, #tpu.memory_space<vmem>>, vector<1x256xf32>
    %4 = vector.broadcast %3 : vector<1x256xf32> to vector<8x256xf32>
    %5 = arith.addf %2, %4 : vector<8x256xf32>
    %cst_5 = arith.constant 0.000000e+00 : f32
    %6 = vector.broadcast %cst_5 : f32 to vector<8x256xf32>
    %7 = arith.maximumf %5, %6 : vector<8x256xf32>
    %8 = math.absf %5 : vector<8x256xf32>
    %cst_6 = arith.constant 0.000000e+00 : f32
    %9 = vector.broadcast %cst_6 : f32 to vector<8x256xf32>
    %10 = arith.subf %9, %8 : vector<8x256xf32>
    %11 = math.exp %10 : vector<8x256xf32>
    %12 = math.log1p %11 : vector<8x256xf32>
    %13 = arith.addf %7, %12 : vector<8x256xf32>
    %14 = arith.truncf %13 : vector<8x256xf32> to vector<8x256xbf16>
    %c0_7 = arith.constant 0 : index
    %c0_8 = arith.constant 0 : index
    %15 = vector.load %arg4[%c0_7, %c0_8] : memref<256x128xbf16, #tpu.memory_space<vmem>>, vector<256x128xbf16>
    %cst_9 = arith.constant dense<0.000000e+00> : vector<8x128xf32>
    %16 = tpu.matmul %14, %15, %cst_9 {dimension_numbers = #tpu.dot_dimension_numbers<[1], [0], [0], [1], [0, 0, 1, 1], [], []>} : vector<8x256xbf16>, vector<256x128xbf16>, vector<8x128xf32> -> vector<8x128xf32>
    %c0_10 = arith.constant 0 : index
    %c0_11 = arith.constant 0 : index
    %17 = vector.load %arg5[%c0_10, %c0_11] : memref<1x128xf32, #tpu.memory_space<vmem>>, vector<1x128xf32>
    %18 = vector.broadcast %17 : vector<1x128xf32> to vector<8x128xf32>
    %19 = arith.addf %16, %18 : vector<8x128xf32>
    %cst_12 = arith.constant 0.000000e+00 : f32
    %20 = vector.broadcast %cst_12 : f32 to vector<8x128xf32>
    %21 = arith.maximumf %19, %20 : vector<8x128xf32>
    %22 = math.absf %19 : vector<8x128xf32>
    %cst_13 = arith.constant 0.000000e+00 : f32
    %23 = vector.broadcast %cst_13 : f32 to vector<8x128xf32>
    %24 = arith.subf %23, %22 : vector<8x128xf32>
    %25 = math.exp %24 : vector<8x128xf32>
    %26 = math.log1p %25 : vector<8x128xf32>
    %27 = arith.addf %21, %26 : vector<8x128xf32>
    %28 = arith.truncf %27 : vector<8x128xf32> to vector<8x128xbf16>
    %c0_14 = arith.constant 0 : index
    %c0_15 = arith.constant 0 : index
    %29 = vector.load %arg6[%c0_14, %c0_15] : memref<128x128xbf16, #tpu.memory_space<vmem>>, vector<128x128xbf16>
    %cst_16 = arith.constant dense<0.000000e+00> : vector<8x128xf32>
    %30 = tpu.matmul %28, %29, %cst_16 {dimension_numbers = #tpu.dot_dimension_numbers<[1], [0], [0], [1], [0, 0, 1, 1], [], []>} : vector<8x128xbf16>, vector<128x128xbf16>, vector<8x128xf32> -> vector<8x128xf32>
    %c0_17 = arith.constant 0 : index
    %c0_18 = arith.constant 0 : index
    %31 = vector.load %arg7[%c0_17, %c0_18] : memref<1x128xf32, #tpu.memory_space<vmem>>, vector<1x128xf32>
    %32 = vector.broadcast %31 : vector<1x128xf32> to vector<8x128xf32>
    %33 = arith.addf %30, %32 : vector<8x128xf32>
    %c0_19 = arith.constant 0 : index
    %c0_20 = arith.constant 0 : index
    %34 = vector.load %arg8[%c0_19, %c0_20] : memref<8x128xf32, #tpu.memory_space<vmem>>, vector<8x128xf32>
    tpu.vector_store %arg8[%c0_19, %c0_20], %33 {strides = array<i32>} : memref<8x128xf32, #tpu.memory_space<vmem>>, vector<8x128xf32>,
    return
  }
  func.func @transform_0(%arg0: i32) -> (i32, i32) {
    %c0_i32 = arith.constant 0 : i32
    %c0_i32_0 = arith.constant 0 : i32
    return %arg0, %c0_i32 : i32, i32
  }
  func.func @transform_1(%arg0: i32) -> (i32, i32) {
    %c0_i32 = arith.constant 0 : i32
    %c0_i32_0 = arith.constant 0 : i32
    %c0_i32_1 = arith.constant 0 : i32
    return %c0_i32, %c0_i32_0 : i32, i32
  }
  func.func @transform_2(%arg0: i32) -> (i32, i32) {
    %c0_i32 = arith.constant 0 : i32
    %c0_i32_0 = arith.constant 0 : i32
    %c0_i32_1 = arith.constant 0 : i32
    return %c0_i32, %c0_i32_0 : i32, i32
  }
  func.func @transform_3(%arg0: i32) -> (i32, i32) {
    %c0_i32 = arith.constant 0 : i32
    %c0_i32_0 = arith.constant 0 : i32
    %c0_i32_1 = arith.constant 0 : i32
    return %c0_i32, %c0_i32_0 : i32, i32
  }
  func.func @transform_4(%arg0: i32) -> (i32, i32) {
    %c0_i32 = arith.constant 0 : i32
    %c0_i32_0 = arith.constant 0 : i32
    %c0_i32_1 = arith.constant 0 : i32
    return %c0_i32, %c0_i32_0 : i32, i32
  }
  func.func @transform_5(%arg0: i32) -> (i32, i32) {
    %c0_i32 = arith.constant 0 : i32
    %c0_i32_0 = arith.constant 0 : i32
    %c0_i32_1 = arith.constant 0 : i32
    return %c0_i32, %c0_i32_0 : i32, i32
  }
  func.func @transform_6(%arg0: i32) -> (i32, i32) {
    %c0_i32 = arith.constant 0 : i32
    %c0_i32_0 = arith.constant 0 : i32
    %c0_i32_1 = arith.constant 0 : i32
    return %c0_i32, %c0_i32_0 : i32, i32
  }
  func.func @transform_7(%arg0: i32) -> (i32, i32) {
    %c0_i32 = arith.constant 0 : i32
    %c0_i32_0 = arith.constant 0 : i32
    return %arg0, %c0_i32 : i32, i32
  }
}

module attributes {stable_mosaic.version = 11 : i64} {
  func.func @_fused_mlp_kernel(%arg0: i32, %arg1: memref<8x512xbf16, #tpu.memory_space<vmem>>, %arg2: memref<512x256xbf16, #tpu.memory_space<vmem>>, %arg3: memref<1x256xf32, #tpu.memory_space<vmem>>, %arg4: memref<256x128xbf16, #tpu.memory_space<vmem>>, %arg5: memref<1x128xf32, #tpu.memory_space<vmem>>, %arg6: memref<128x128xbf16, #tpu.memory_space<vmem>>, %arg7: memref<1x128xf32, #tpu.memory_space<vmem>>, %arg8: memref<8x128xf32, #tpu.memory_space<vmem>>) attributes {dimension_semantics = [#tpu.dimension_semantics<parallel>], iteration_bounds = array<i64: 1>, scalar_prefetch = 0 : i64, scratch_operands = 0 : i64, tpu.core_type = #tpu.core_type<tc>, window_params = [{transform_indices = @transform_0, window_bounds = array<i64: 8, 512>}, {pipeline_mode = #tpu.pipeline_mode<synchronous>, transform_indices = @transform_1, window_bounds = array<i64: 512, 256>}, {pipeline_mode = #tpu.pipeline_mode<synchronous>, transform_indices = @transform_2, window_bounds = array<i64: 1, 256>}, {pipeline_mode = #tpu.pipeline_mode<synchronous>, transform_indices = @transform_3, window_bounds = array<i64: 256, 128>}, {pipeline_mode = #tpu.pipeline_mode<synchronous>, transform_indices = @transform_4, window_bounds = array<i64: 1, 128>}, {pipeline_mode = #tpu.pipeline_mode<synchronous>, transform_indices = @transform_5, window_bounds = array<i64: 128, 128>}, {pipeline_mode = #tpu.pipeline_mode<synchronous>, transform_indices = @transform_6, window_bounds = array<i64: 1, 128>}, {transform_indices = @transform_7, window_bounds = array<i64: 8, 128>}]} {
    %c0 = arith.constant 0 : index
    %c0_0 = arith.constant 0 : index
    %0 = vector.load %arg1[%c0, %c0_0] : memref<8x512xbf16, #tpu.memory_space<vmem>>, vector<8x512xbf16>
    %c0_1 = arith.constant 0 : index
    %c0_2 = arith.constant 0 : index
    %1 = vector.load %arg2[%c0_1, %c0_2] : memref<512x256xbf16, #tpu.memory_space<vmem>>, vector<512x256xbf16>
    %cst = arith.constant dense<0.000000e+00> : vector<8x256xf32>
    %2 = tpu.matmul %0, %1, %cst {dimension_numbers = #tpu.dot_dimension_numbers<[1], [0], [0], [1], [0, 0, 1, 1], [], []>} : vector<8x512xbf16>, vector<512x256xbf16>, vector<8x256xf32> -> vector<8x256xf32>
    %c0_3 = arith.constant 0 : index
    %c0_4 = arith.constant 0 : index
    %3 = vector.load %arg3[%c0_3, %c0_4] : memref<1x256xf32, #tpu.memory_space<vmem>>, vector<1x256xf32>
    %4 = vector.broadcast %3 : vector<1x256xf32> to vector<8x256xf32>
    %5 = arith.addf %2, %4 : vector<8x256xf32>
    %cst_5 = arith.constant 0.000000e+00 : f32
    %6 = vector.broadcast %cst_5 : f32 to vector<8x256xf32>
    %7 = arith.maximumf %5, %6 : vector<8x256xf32>
    %8 = math.absf %5 : vector<8x256xf32>
    %cst_6 = arith.constant 0.000000e+00 : f32
    %9 = vector.broadcast %cst_6 : f32 to vector<8x256xf32>
    %10 = arith.subf %9, %8 : vector<8x256xf32>
    %11 = math.exp %10 : vector<8x256xf32>
    %12 = math.log1p %11 : vector<8x256xf32>
    %13 = arith.addf %7, %12 : vector<8x256xf32>
    %14 = arith.truncf %13 : vector<8x256xf32> to vector<8x256xbf16>
    %c0_7 = arith.constant 0 : index
    %c0_8 = arith.constant 0 : index
    %15 = vector.load %arg4[%c0_7, %c0_8] : memref<256x128xbf16, #tpu.memory_space<vmem>>, vector<256x128xbf16>
    %cst_9 = arith.constant dense<0.000000e+00> : vector<8x128xf32>
    %16 = tpu.matmul %14, %15, %cst_9 {dimension_numbers = #tpu.dot_dimension_numbers<[1], [0], [0], [1], [0, 0, 1, 1], [], []>} : vector<8x256xbf16>, vector<256x128xbf16>, vector<8x128xf32> -> vector<8x128xf32>
    %c0_10 = arith.constant 0 : index
    %c0_11 = arith.constant 0 : index
    %17 = vector.load %arg5[%c0_10, %c0_11] : memref<1x128xf32, #tpu.memory_space<vmem>>, vector<1x128xf32>
    %18 = vector.broadcast %17 : vector<1x128xf32> to vector<8x128xf32>
    %19 = arith.addf %16, %18 : vector<8x128xf32>
    %cst_12 = arith.constant 0.000000e+00 : f32
    %20 = vector.broadcast %cst_12 : f32 to vector<8x128xf32>
    %21 = arith.maximumf %19, %20 : vector<8x128xf32>
    %22 = math.absf %19 : vector<8x128xf32>
    %cst_13 = arith.constant 0.000000e+00 : f32
    %23 = vector.broadcast %cst_13 : f32 to vector<8x128xf32>
    %24 = arith.subf %23, %22 : vector<8x128xf32>
    %25 = math.exp %24 : vector<8x128xf32>
    %26 = math.log1p %25 : vector<8x128xf32>
    %27 = arith.addf %21, %26 : vector<8x128xf32>
    %28 = arith.truncf %27 : vector<8x128xf32> to vector<8x128xbf16>
    %c0_14 = arith.constant 0 : index
    %c0_15 = arith.constant 0 : index
    %29 = vector.load %arg6[%c0_14, %c0_15] : memref<128x128xbf16, #tpu.memory_space<vmem>>, vector<128x128xbf16>
    %cst_16 = arith.constant dense<0.000000e+00> : vector<8x128xf32>
    %30 = tpu.matmul %28, %29, %cst_16 {dimension_numbers = #tpu.dot_dimension_numbers<[1], [0], [0], [1], [0, 0, 1, 1], [], []>} : vector<8x128xbf16>, vector<128x128xbf16>, vector<8x128xf32> -> vector<8x128xf32>
    %c0_17 = arith.constant 0 : index
    %c0_18 = arith.constant 0 : index
    %31 = vector.load %arg7[%c0_17, %c0_18] : memref<1x128xf32, #tpu.memory_space<vmem>>, vector<1x128xf32>
    %32 = vector.broadcast %31 : vector<1x128xf32> to vector<8x128xf32>
    %33 = arith.addf %30, %32 : vector<8x128xf32>
    %c0_19 = arith.constant 0 : index
    %c0_20 = arith.constant 0 : index
    %34 = vector.load %arg8[%c0_19, %c0_20] : memref<8x128xf32, #tpu.memory_space<vmem>>, vector<8x128xf32>
    tpu.vector_store %arg8[%c0_19, %c0_20], %33 {strides = array<i32>} : memref<8x128xf32, #tpu.memory_space<vmem>>, vector<8x128xf32>,
    return
  }
  func.func @transform_0(%arg0: i32) -> (i32, i32) {
    %c0_i32 = arith.constant 0 : i32
    %c0_i32_0 = arith.constant 0 : i32
    return %arg0, %c0_i32 : i32, i32
  }
  func.func @transform_1(%arg0: i32) -> (i32, i32) {
    %c0_i32 = arith.constant 0 : i32
    %c0_i32_0 = arith.constant 0 : i32
    %c0_i32_1 = arith.constant 0 : i32
    return %c0_i32, %c0_i32_0 : i32, i32
  }
  func.func @transform_2(%arg0: i32) -> (i32, i32) {
    %c0_i32 = arith.constant 0 : i32
    %c0_i32_0 = arith.constant 0 : i32
    %c0_i32_1 = arith.constant 0 : i32
    return %c0_i32, %c0_i32_0 : i32, i32
  }
  func.func @transform_3(%arg0: i32) -> (i32, i32) {
    %c0_i32 = arith.constant 0 : i32
    %c0_i32_0 = arith.constant 0 : i32
    %c0_i32_1 = arith.constant 0 : i32
    return %c0_i32, %c0_i32_0 : i32, i32
  }
  func.func @transform_4(%arg0: i32) -> (i32, i32) {
    %c0_i32 = arith.constant 0 : i32
    %c0_i32_0 = arith.constant 0 : i32
    %c0_i32_1 = arith.constant 0 : i32
    return %c0_i32, %c0_i32_0 : i32, i32
  }
  func.func @transform_5(%arg0: i32) -> (i32, i32) {
    %c0_i32 = arith.constant 0 : i32
    %c0_i32_0 = arith.constant 0 : i32
    %c0_i32_1 = arith.constant 0 : i32
    return %c0_i32, %c0_i32_0 : i32, i32
  }
  func.func @transform_6(%arg0: i32) -> (i32, i32) {
    %c0_i32 = arith.constant 0 : i32
    %c0_i32_0 = arith.constant 0 : i32
    %c0_i32_1 = arith.constant 0 : i32
    return %c0_i32, %c0_i32_0 : i32, i32
  }
  func.func @transform_7(%arg0: i32) -> (i32, i32) {
    %c0_i32 = arith.constant 0 : i32
    %c0_i32_0 = arith.constant 0 : i32
    return %arg0, %c0_i32 : i32, i32
  }
}

</mosaic_0001>

<bundles_post_ra>
// kernel: tpu_custom_call.1
= control target key start
LH: loop header
LB: loop body
LE: loop exit
PB: predicated region body
PF: predicated region fallthrough
CT: control target
= control target key end

     0   :  { %12 = vsyncpa [#allocation3], 0  ;;  %s1402_s0 = inlined_call_operand.hbm [shape: bf16[8,512], index: 0, kind: input, shape index: {}]   ;;  %s1403_s1 = inlined_call_operand.hbm [shape: bf16[512,256], index: 1, kind: input, shape index: {}]   ;;  %s1404_s2 = inlined_call_operand.vmem [shape: f32[1,256], index: 2, kind: input, shape index: {}]   ;;  %s1405_s3 = inlined_call_operand.hbm [shape: bf16[256,128], index: 3, kind: input, shape index: {}]   ;;  %s1406_s4 = inlined_call_operand.vmem [shape: f32[1,128], index: 4, kind: input, shape index: {}]   ;;  %s1407_s5 = inlined_call_operand.hbm [shape: bf16[128,128], index: 5, kind: input, shape index: {}]   ;;  %s1408_s6 = inlined_call_operand.vmem [shape: f32[1,128], index: 6, kind: input, shape index: {}]   ;;  %s1409_s7 = inlined_call_operand.hbm [shape: f32[8,128], index: 7, kind: output, shape index: {}]  }
   0x1   :  { %13 = vsyncpa [#allocation6], 0 }
   0x2   :  { %14 = vsyncpa [#allocation9], 0 }
   0x3   :  { %15 = vsyncpa [#allocation4], 0  ;;  %s1327_s24 = smov [#allocation5]  }
   0x4   :  { %s31_s25 = sshll.u32 %s1327_s24, 4  ;;  %s32_s25 = int_to_ptr.vmem [resolvable:$true] %s31_s25 }
   0x5   :  { %s1227_s26 = scalar_lea.vmem %s32_s25, 8192  ;;  %p1232_p1 = scmp.lt.s32.totalorder %s32_s25, %s32_s25 }
   0x6   :  { %p1228_p0 = scmp.ne.s32.totalorder %s32_s25, %s1227_s26  ;;  %p1233_p2 = scmp.lt.s32.totalorder %s1227_s26, %s1227_s26 }
   0x8   :  { %p1234_p3 = por %p1233_p2, %p1232_p1 }
   0xa   :  { %p1235_p4 = pnand %p1234_p3, %p1228_p0 }
   0xc   :  { %1238 = shalt.err (!%p1235_p4)
}
   0xd   :  { %s1328_s27 = smov 128   ;;  %s1329_s28 = smov 8  }
   0xe   :  { %37 = dma.hbm_to_vmem [thread:$0]  %s1403_s1, 8192, %s32_s25, [#allocation6], %s1328_s27, %s1328_s27, %s1329_s28  }
   0xf   :  { %s1330_s8 = smov [#allocation2]   ;;  %s1331_s10 = smov [#allocation7]  }
  0x10   :  { %s22_s9 = sshll.u32 %s1330_s8, 4  ;;  %s45_s11 = sshll.u32 %s1331_s10, 4  ;;  %s23_s9 = int_to_ptr.vmem [resolvable:$true] %s22_s9  ;;  %s46_s11 = int_to_ptr.vmem [resolvable:$true] %s45_s11 }
  0x11   :  { %s1247_s12 = scalar_lea.vmem %s23_s9, 256  ;;  %p1252_p6 = scmp.lt.s32.totalorder %s23_s9, %s23_s9 }
  0x12   :  { %p1248_p5 = scmp.ne.s32.totalorder %s23_s9, %s1247_s12  ;;  %p1253_p7 = scmp.lt.s32.totalorder %s1247_s12, %s1247_s12 }
  0x14   :  { %p1254_p8 = por %p1253_p7, %p1252_p6 }
  0x16   :  { %p1255_p9 = pnand %p1254_p8, %p1248_p5 }
  0x18   :  { %1258 = shalt.err (!%p1255_p9)
}
  0x19   :  { %25 = dma.hbm_to_vmem [thread:$0]  %s1402_s0, 256, %s23_s9, [#allocation3]  }
  0x1a   :  { %s1267_s15 = scalar_lea.vmem %s46_s11, 2048  ;;  %p1272_p11 = scmp.lt.s32.totalorder %s46_s11, %s46_s11 }
  0x1b   :  { %p1268_p10 = scmp.ne.s32.totalorder %s46_s11, %s1267_s15  ;;  %p1273_p12 = scmp.lt.s32.totalorder %s1267_s15, %s1267_s15 }
  0x1d   :  { %p1274_p13 = por %p1273_p12, %p1272_p11 }
  0x1f   :  { %p1275_p0 = pnand %p1274_p13, %p1268_p10 }
  0x21   :  { %1278 = shalt.err (!%p1275_p0)
}
  0x22   :  { %s1332_s1 = smov 64   ;;  %s1333_s16 = smov 4  }
  0x23   :  { %51 = dma.hbm_to_vmem [thread:$0]  %s1405_s3, 2048, %s46_s11, [#allocation6], %s1332_s1, %s1332_s1, %s1333_s16  }
  0x24   :  { %s1334_s19 = smov [#allocation8]  }
  0x25   :  { %s59_s20 = sshll.u32 %s1334_s19, 4  ;;  %s60_s20 = int_to_ptr.vmem [resolvable:$true] %s59_s20 }
  0x26   :  { %s1287_s21 = scalar_lea.vmem %s60_s20, 1024  ;;  %p1292_p2 = scmp.lt.s32.totalorder %s60_s20, %s60_s20 }
  0x27   :  { %p1288_p1 = scmp.ne.s32.totalorder %s60_s20, %s1287_s21  ;;  %p1293_p3 = scmp.lt.s32.totalorder %s1287_s21, %s1287_s21 }
  0x29   :  { %p1294_p4 = por %p1293_p3, %p1292_p2 }
  0x2b   :  { %p1295_p5 = pnand %p1294_p4, %p1288_p1 }
  0x2d   :  { %1298 = shalt.err (!%p1295_p5)
}
  0x2e   :  { %65 = dma.hbm_to_vmem [thread:$0]  %s1407_s5, 1024, %s60_s20, [#allocation9], %s1332_s1, %s1332_s1, %s1333_s16  }
  0x2f   :  { %1319 = dma.done.wait [#allocation3], 256  }
  0x30   :  { %1320 = vsyncadd [#allocation3], 4294967040 }
  0x31   :  { %1321 = dma.done.wait [#allocation6], 10240  }
  0x32   :  { %1322 = vsyncadd [#allocation6], 4294957056 }
  0x33   :  { %1323 = dma.done.wait [#allocation9], 1024  }
  0x34   :  { %1324 = vsyncadd [#allocation9], 4294966272  ;;  %v1083_v0 = vld [vmem:[#allocation5 + $0x74] ss:$8 sps:$4 sm:$0xff]   ;;  %v1087_v2 = vld [vmem:[#allocation5 + $0x70] ss:$8 sps:$4 sm:$0xff]  }
  0x35   :  { %v1085_v1 = vld [vmem:[#allocation5 + $0x174] ss:$8 sps:$4 sm:$0xff]   ;;  %493 = vmatprep.subr.bf16.mxu0 %v1083_v0  ;;  %v1088_v3 = vld [vmem:[#allocation5 + $0x170] ss:$8 sps:$4 sm:$0xff]   ;;  %v1089_v4 = vld [vmem:[#allocation5 + $0x64] ss:$8 sps:$4 sm:$0xff]  }
  0x36   :  { %534 = vmatprep.subr.bf16.mxu1 %v1085_v1  ;;  %494 = vmatpush1.bf16.msra.mxu0 %v1087_v2  ;;  %v1091_v5 = vld [vmem:[#allocation5 + $0x164] ss:$8 sps:$4 sm:$0xff]   ;;  %v1093_v6 = vld [vmem:[#allocation5 + $0x60] ss:$8 sps:$4 sm:$0xff]   ;;  %v1095_v8 = vld [vmem:[#allocation5 + $0x54] ss:$8 sps:$4 sm:$0xff]  }
  0x37   :  { %535 = vmatpush1.bf16.msra.mxu1 %v1088_v3  ;;  %495 = vmatprep.subr.bf16.mxu0 %v1089_v4  ;;  %v1094_v7 = vld [vmem:[#allocation5 + $0x160] ss:$8 sps:$4 sm:$0xff]   ;;  %v1097_v9 = vld [vmem:[#allocation5 + $0x154] ss:$8 sps:$4 sm:$0xff]   ;;  %v1099_v10 = vld [vmem:[#allocation5 + $0x50] ss:$8 sps:$4 sm:$0xff]  }
  0x38   :  { %536 = vmatprep.subr.bf16.mxu1 %v1091_v5  ;;  %v1100_v11 = vld [vmem:[#allocation5 + $0x150] ss:$8 sps:$4 sm:$0xff]   ;;  %v1101_v12 = vld [vmem:[#allocation5 + $0x44] ss:$8 sps:$4 sm:$0xff]   ;;  %v1105_v14 = vld [vmem:[#allocation5 + $0x40] ss:$8 sps:$4 sm:$0xff]  }
  0x39   :  { %v1103_v13 = vld [vmem:[#allocation5 + $0x144] ss:$8 sps:$4 sm:$0xff]   ;;  %v1106_v15 = vld [vmem:[#allocation5 + $0x140] ss:$8 sps:$4 sm:$0xff]   ;;  %v1107_v16 = vld [vmem:[#allocation5 + $0x34] ss:$8 sps:$4 sm:$0xff]  }
  0x3a   :  { %496 = vmatpush1.bf16.msra.mxu0 %v1093_v6  ;;  %v1109_v17 = vld [vmem:[#allocation5 + $0x134] ss:$8 sps:$4 sm:$0xff]   ;;  %v1111_v18 = vld [vmem:[#allocation5 + $0x30] ss:$8 sps:$4 sm:$0xff]   ;;  %v1113_v20 = vld [vmem:[#allocation5 + $0x24] ss:$8 sps:$4 sm:$0xff]  }
  0x3b   :  { %537 = vmatpush1.bf16.msra.mxu1 %v1094_v7  ;;  %497 = vmatprep.subr.bf16.mxu0 %v1095_v8  ;;  %v1112_v19 = vld [vmem:[#allocation5 + $0x130] ss:$8 sps:$4 sm:$0xff]   ;;  %v1115_v21 = vld [vmem:[#allocation5 + $0x124] ss:$8 sps:$4 sm:$0xff]   ;;  %v1117_v22 = vld [vmem:[#allocation5 + $0x20] ss:$8 sps:$4 sm:$0xff]  }
  0x3c   :  { %538 = vmatprep.subr.bf16.mxu1 %v1097_v9  ;;  %v1118_v23 = vld [vmem:[#allocation5 + $0x120] ss:$8 sps:$4 sm:$0xff]   ;;  %v1119_v24 = vld [vmem:[#allocation5 + $0x14] ss:$8 sps:$4 sm:$0xff]   ;;  %v1123_v26 = vld [vmem:[#allocation5 + $0x10] ss:$8 sps:$4 sm:$0xff]  }
  0x3d   :  { %v1121_v25 = vld [vmem:[#allocation5 + $0x114] ss:$8 sps:$4 sm:$0xff]   ;;  %v1124_v27 = vld [vmem:[#allocation5 + $0x110] ss:$8 sps:$4 sm:$0xff]   ;;  %v1125_v28 = vld [vmem:[#allocation5 + $0x4] ss:$8 sps:$4 sm:$0xff]  }
  0x3e   :  { %498 = vmatpush1.bf16.msra.mxu0 %v1099_v10  ;;  %v1127_v29 = vld [vmem:[#allocation5 + $0x104] ss:$8 sps:$4 sm:$0xff]   ;;  %v1129_v30 = vld [vmem:[#allocation5] ss:$8 sps:$4 sm:$0xff]   ;;  %v1131_v32 = vld [vmem:[#allocation5 + $0xf4] ss:$8 sps:$4 sm:$0xff]  }
  0x3f   :  { %539 = vmatpush1.bf16.msra.mxu1 %v1100_v11  ;;  %499 = vmatprep.subr.bf16.mxu0 %v1101_v12  ;;  %v1130_v31 = vld [vmem:[#allocation5 + $0x100] ss:$8 sps:$4 sm:$0xff]   ;;  %v1133_v33 = vld [vmem:[#allocation5 + $0x1f4] ss:$8 sps:$4 sm:$0xff]   ;;  %v1135_v34 = vld [vmem:[#allocation5 + $0xf0] ss:$8 sps:$4 sm:$0xff]  }
  0x40   :  { %540 = vmatprep.subr.bf16.mxu1 %v1103_v13  ;;  %v1136_v35 = vld [vmem:[#allocation5 + $0x1f0] ss:$8 sps:$4 sm:$0xff]   ;;  %v1137_v36 = vld [vmem:[#allocation5 + $0xe4] ss:$8 sps:$4 sm:$0xff]   ;;  %v1141_v38 = vld [vmem:[#allocation5 + $0xe0] ss:$8 sps:$4 sm:$0xff]  }
  0x41   :  { %v1139_v37 = vld [vmem:[#allocation5 + $0x1e4] ss:$8 sps:$4 sm:$0xff]   ;;  %v1142_v39 = vld [vmem:[#allocation5 + $0x1e0] ss:$8 sps:$4 sm:$0xff]   ;;  %v1143_v40 = vld [vmem:[#allocation5 + $0xd4] ss:$8 sps:$4 sm:$0xff]  }
  0x42   :  { %500 = vmatpush1.bf16.msra.mxu0 %v1105_v14  ;;  %v1145_v41 = vld [vmem:[#allocation5 + $0x1d4] ss:$8 sps:$4 sm:$0xff]   ;;  %v1147_v42 = vld [vmem:[#allocation5 + $0xd0] ss:$8 sps:$4 sm:$0xff]   ;;  %v1149_v44 = vld [vmem:[#allocation5 + $0xc4] ss:$8 sps:$4 sm:$0xff]  }
  0x43   :  { %541 = vmatpush1.bf16.msra.mxu1 %v1106_v15  ;;  %501 = vmatprep.subr.bf16.mxu0 %v1107_v16  ;;  %v1148_v43 = vld [vmem:[#allocation5 + $0x1d0] ss:$8 sps:$4 sm:$0xff]   ;;  %v1151_v45 = vld [vmem:[#allocation5 + $0x1c4] ss:$8 sps:$4 sm:$0xff]   ;;  %v1153_v46 = vld [vmem:[#allocation5 + $0xc0] ss:$8 sps:$4 sm:$0xff]  }
  0x44   :  { %542 = vmatprep.subr.bf16.mxu1 %v1109_v17  ;;  %v1154_v47 = vld [vmem:[#allocation5 + $0x1c0] ss:$8 sps:$4 sm:$0xff]   ;;  %v81_v48 = vld [vmem:[#allocation2] sm:$0xff]  ;;  %v82_v52 = vld [vmem:[#allocation2 + $0x8] sm:$0xff]  ;;  %vm1336_vm2 = vmmov 0   ;;  %s1337_s25 = smov [#allocation10]  }
  0x45   :  { %v1155_v49 = vld [vmem:[#allocation5 + $0xb4] ss:$8 sps:$4 sm:$0xff]   ;;  %v928_v51 = vcombine.high %v81_v48, %v81_v48  ;;  %v930_v53 = vcombine.high %v82_v52, %v82_v52  ;;  %v1159_v54 = vld [vmem:[#allocation5 + $0xb0] ss:$8 sps:$4 sm:$0xff]   ;;  %v1161_v56 = vld [vmem:[#allocation5 + $0xa4] ss:$8 sps:$4 sm:$0xff]   ;;  %v927_v4 = vcombine.low %v81_v48, %v81_v48  ;;  %v929_v5 = vcombine.low %v82_v52, %v82_v52 }
  0x46   :  { %502 = vmatpush1.bf16.msra.mxu0 %v1111_v18  ;;  %v1157_v50 = vld [vmem:[#allocation5 + $0x1b4] ss:$8 sps:$4 sm:$0xff]   ;;  %v1160_v55 = vld [vmem:[#allocation5 + $0x1b0] ss:$8 sps:$4 sm:$0xff]   ;;  %v1163_v57 = vld [vmem:[#allocation5 + $0x1a4] ss:$8 sps:$4 sm:$0xff]  }
  0x47   :  { %543 = vmatpush1.bf16.msra.mxu1 %v1112_v19  ;;  %503 = vmatprep.subr.bf16.mxu0 %v1113_v20  ;;  %v1165_v58 = vld [vmem:[#allocation5 + $0xa0] ss:$8 sps:$4 sm:$0xff]   ;;  %v1167_v60 = vld [vmem:[#allocation5 + $0x94] ss:$8 sps:$4 sm:$0xff]   ;;  %v1171_v62 = vld [vmem:[#allocation5 + $0x90] ss:$8 sps:$4 sm:$0xff]  }
  0x48   :  { %544 = vmatprep.subr.bf16.mxu1 %v1115_v21  ;;  %525 = vmatprep.mubr.bf16.mxu0 %v928_v51  ;;  %v1166_v59 = vld [vmem:[#allocation5 + $0x1a0] ss:$8 sps:$4 sm:$0xff]   ;;  %v1169_v61 = vld [vmem:[#allocation5 + $0x194] ss:$8 sps:$4 sm:$0xff]   ;;  %v1172_v63 = vld [vmem:[#allocation5 + $0x190] ss:$8 sps:$4 sm:$0xff]  }
  0x49   :  { %566 = vmatprep.mubr.bf16.mxu1 %v930_v53  ;;  %v1173_v0 = vld [vmem:[#allocation5 + $0x84] ss:$8 sps:$4 sm:$0xff]   ;;  %v1177_v2 = vld [vmem:[#allocation5 + $0x80] ss:$8 sps:$4 sm:$0xff]   ;;  %v1183_v6 = vld [vmem:[#allocation7 + $0x78] sm:$0xff]   ;;  %s916_s26 = sshll.u32 %s1337_s25, 4  ;;  %s917_s26 = int_to_ptr.vmem [resolvable:$true] %s916_s26 }
  0x4a   :  { %504 = vmatpush1.bf16.msra.mxu0 %v1117_v22  ;;  %v1175_v1 = vld [vmem:[#allocation5 + $0x184] ss:$8 sps:$4 sm:$0xff]   ;;  %v1178_v3 = vld [vmem:[#allocation5 + $0x180] ss:$8 sps:$4 sm:$0xff]   ;;  %v1184_v7 = vld [vmem:[#allocation7 + $0x38] sm:$0xff]   ;;  %v149_v22 = vlaneseq  ;;  %s1299_s27 = scalar_lea.vmem %s917_s26, 128  ;;  %p1304_p7 = scmp.lt.s32.totalorder %s917_s26, %s917_s26 }
  0x4b   :  { %545 = vmatpush1.bf16.msra.mxu1 %v1118_v23  ;;  %505 = vmatprep.subr.bf16.mxu0 %v1119_v24  ;;  %v1185_v8 = vld [vmem:[#allocation7 + $0x70] sm:$0xff]   ;;  %v1187_v10 = vld [vmem:[#allocation7 + $0x68] sm:$0xff]   ;;  %v1189_v12 = vld [vmem:[#allocation7 + $0x60] sm:$0xff]   ;;  %p1300_p6 = scmp.ne.s32.totalorder %s917_s26, %s1299_s27  ;;  %p1305_p8 = scmp.lt.s32.totalorder %s1299_s27, %s1299_s27 }
  0x4c   :  { %546 = vmatprep.subr.bf16.mxu1 %v1121_v25  ;;  %v1186_v9 = vld [vmem:[#allocation7 + $0x30] sm:$0xff]   ;;  %v1188_v11 = vld [vmem:[#allocation7 + $0x28] sm:$0xff]   ;;  %v1190_v13 = vld [vmem:[#allocation7 + $0x20] sm:$0xff]   ;;  %v150_v23 = vshrl.u32 %v149_v22, 7 }
  0x4d   :  { %v1191_v14 = vld [vmem:[#allocation7 + $0x58] sm:$0xff]   ;;  %v1193_v16 = vld [vmem:[#allocation7 + $0x50] sm:$0xff]   ;;  %v1195_v18 = vld [vmem:[#allocation7 + $0x48] sm:$0xff]   ;;  %p1306_p9 = por %p1305_p8, %p1304_p7 }
  0x4e   :  { %506 = vmatpush1.bf16.msra.mxu0 %v1123_v26  ;;  %v1192_v15 = vld [vmem:[#allocation7 + $0x18] sm:$0xff]   ;;  %v1194_v17 = vld [vmem:[#allocation7 + $0x10] sm:$0xff]   ;;  %v1196_v19 = vld [vmem:[#allocation7 + $0x8] sm:$0xff]   ;;  %v151_v24 = vsub.s32 0, %v150_v23  ;;  %v155_v26 = vsub.s32 1, %v150_v23 }
  0x4f   :  { %547 = vmatpush1.bf16.msra.mxu1 %v1124_v27  ;;  %507 = vmatprep.subr.bf16.mxu0 %v1125_v28  ;;  %v1197_v20 = vld [vmem:[#allocation7 + $0x40] sm:$0xff]   ;;  %v147_v25 = vld [vmem:[%s1404_s2] sm:$0x3]  ;;  %p1307_p10 = pnand %p1306_p9, %p1300_p6 }
  0x50   :  { %548 = vmatprep.subr.bf16.mxu1 %v1127_v29  ;;  %v1198_v21 = vld [vmem:[#allocation7] sm:$0xff]   ;;  %v152_v27 = vrot.slane %v147_v25, %v151_v24  ;;  %v156_v28 = vrot.slane %v147_v25, %v155_v26 }
  0x52   :  { %508 = vmatpush1.bf16.msra.mxu0 %v1129_v30 }
  0x53   :  { %549 = vmatpush1.bf16.msra.mxu1 %v1130_v31  ;;  %509 = vmatprep.subr.bf16.mxu0 %v1131_v32 }
  0x54   :  { %550 = vmatprep.subr.bf16.mxu1 %v1133_v33 }
  0x56   :  { %510 = vmatpush2.bf16.msra.mxu0 %v1135_v34 }
  0x57   :  { %551 = vmatpush2.bf16.msra.mxu1 %v1136_v35  ;;  %511 = vmatprep.subr.bf16.mxu0 %v1137_v36 }
  0x58   :  { %552 = vmatprep.subr.bf16.mxu1 %v1139_v37 }
  0x5a   :  { %512 = vmatpush2.bf16.msra.mxu0 %v1141_v38 }
  0x5b   :  { %553 = vmatpush2.bf16.msra.mxu1 %v1142_v39  ;;  %513 = vmatprep.subr.bf16.mxu0 %v1143_v40 }
  0x5c   :  { %554 = vmatprep.subr.bf16.mxu1 %v1145_v41 }
  0x5e   :  { %514 = vmatpush2.bf16.msra.mxu0 %v1147_v42 }
  0x5f   :  { %555 = vmatpush2.bf16.msra.mxu1 %v1148_v43  ;;  %515 = vmatprep.subr.bf16.mxu0 %v1149_v44 }
  0x60   :  { %556 = vmatprep.subr.bf16.mxu1 %v1151_v45 }
  0x62   :  { %516 = vmatpush2.bf16.msra.mxu0 %v1153_v46 }
  0x63   :  { %557 = vmatpush2.bf16.msra.mxu1 %v1154_v47  ;;  %517 = vmatprep.subr.bf16.mxu0 %v1155_v49 }
  0x64   :  { %558 = vmatprep.subr.bf16.mxu1 %v1157_v50 }
  0x66   :  { %518 = vmatpush2.bf16.msra.mxu0 %v1159_v54 }
  0x67   :  { %559 = vmatpush2.bf16.msra.mxu1 %v1160_v55  ;;  %519 = vmatprep.subr.bf16.mxu0 %v1161_v56 }
  0x68   :  { %560 = vmatprep.subr.bf16.mxu1 %v1163_v57 }
  0x6a   :  { %520 = vmatpush2.bf16.msra.mxu0 %v1165_v58 }
  0x6b   :  { %561 = vmatpush2.bf16.msra.mxu1 %v1166_v59  ;;  %521 = vmatprep.subr.bf16.mxu0 %v1167_v60 }
  0x6c   :  { %562 = vmatprep.subr.bf16.mxu1 %v1169_v61 }
  0x6e   :  { %522 = vmatpush2.bf16.msra.mxu0 %v1171_v62 }
  0x6f   :  { %563 = vmatpush2.bf16.msra.mxu1 %v1172_v63  ;;  %523 = vmatprep.subr.bf16.mxu0 %v1173_v0 }
  0x70   :  { %564 = vmatprep.subr.bf16.mxu1 %v1175_v1 }
  0x72   :  { %524 = vmatpush2.bf16.msra.mxu0 %v1177_v2 }
  0x73   :  { %565 = vmatpush2.bf16.msra.mxu1 %v1178_v3  ;;  %1021 = vmatprep.subr.bf16.mxu0 %v1183_v6 }
  0x75   :  { %526 = vmatmul.mubr.bf16.vlgmr.msra.gmra.mxu0 %v927_v4 }
  0x76   :  { %567 = vmatmul.mubr.bf16.vlgmr.msra.gmra.mxu1 %v929_v5  ;;  %1022 = vmatpush3.bf16.msra.mxu0 %v1184_v7  ;;  %v1199_v7 = vld [vmem:[#allocation8 + $0x38] sm:$0xff]  }
  0x77   :  { %1023 = vmatprep.subr.bf16.mxu0 %v1185_v8  ;;  %v1335_v8 = vmov 0.0  }
  0x78   :  { %1052 = vmatprep.subr.bf16.mxu1 %v1335_v8  ;;  %1068 = vmatprep.mubr.msk.bf16.mxu1 %vm1336_vm2, %v1335_v8 }
  0x79   :  { %1053 = vmatpush3.bf16.msra.mxu1 %v1199_v7 }
  0x7a   :  { %1024 = vmatpush3.bf16.msra.mxu0 %v1186_v9  ;;  %1054 = vmatprep.subr.bf16.mxu1 %v1335_v8  ;;  %v1200_v9 = vld [vmem:[#allocation8 + $0x30] sm:$0xff]  }
  0x7b   :  { %1025 = vmatprep.subr.bf16.mxu0 %v1187_v10  ;;  %v1201_v10 = vld [vmem:[#allocation8 + $0x28] sm:$0xff]  }
  0x7d   :  { %1055 = vmatpush3.bf16.msra.mxu1 %v1200_v9 }
  0x7e   :  { %1026 = vmatpush3.bf16.msra.mxu0 %v1188_v11  ;;  %1056 = vmatprep.subr.bf16.mxu1 %v1335_v8  ;;  %v1202_v11 = vld [vmem:[#allocation8 + $0x20] sm:$0xff]  }
  0x7f   :  { %1027 = vmatprep.subr.bf16.mxu0 %v1189_v12  ;;  %v1203_v12 = vld [vmem:[#allocation8 + $0x18] sm:$0xff]  }
  0x81   :  { %1057 = vmatpush3.bf16.msra.mxu1 %v1201_v10 }
  0x82   :  { %1028 = vmatpush3.bf16.msra.mxu0 %v1190_v13  ;;  %1058 = vmatprep.subr.bf16.mxu1 %v1335_v8  ;;  %v1204_v13 = vld [vmem:[#allocation8 + $0x10] sm:$0xff]  }
  0x83   :  { %1029 = vmatprep.subr.bf16.mxu0 %v1191_v14  ;;  %v1205_v14 = vld [vmem:[#allocation8 + $0x8] sm:$0xff]  }
  0x85   :  { %1059 = vmatpush3.bf16.msra.mxu1 %v1202_v11 }
  0x86   :  { %1030 = vmatpush3.bf16.msra.mxu0 %v1192_v15  ;;  %1060 = vmatprep.subr.bf16.mxu1 %v1335_v8  ;;  %v1206_v15 = vld [vmem:[#allocation8] sm:$0xff]  }
  0x87   :  { %1031 = vmatprep.subr.bf16.mxu0 %v1193_v16 }
  0x89   :  { %1061 = vmatpush3.bf16.msra.mxu1 %v1203_v12 }
  0x8a   :  { %1032 = vmatpush3.bf16.msra.mxu0 %v1194_v17  ;;  %1062 = vmatprep.subr.bf16.mxu1 %v1335_v8  ;;  %v995_v17 = vld [vmem:[%s1406_s4] ss:$0 sm:$0xff] }
  0x8b   :  { %1033 = vmatprep.subr.bf16.mxu0 %v1195_v18 }
  0x8d   :  { %1063 = vmatpush3.bf16.msra.mxu1 %v1204_v13 }
  0x8e   :  { %1034 = vmatpush3.bf16.msra.mxu0 %v1196_v19  ;;  %1064 = vmatprep.subr.bf16.mxu1 %v1335_v8 }
  0x8f   :  { %1035 = vmatprep.subr.bf16.mxu0 %v1197_v20 }
  0x91   :  { %1065 = vmatpush3.bf16.msra.mxu1 %v1205_v14 }
  0x92   :  { %1036 = vmatpush3.bf16.msra.mxu0 %v1198_v21  ;;  %1066 = vmatprep.subr.bf16.mxu1 %v1335_v8 }
  0x95   :  { %1067 = vmatpush3.bf16.msra.mxu1 %v1206_v15 }
 0x135   :  { %v527_v29 = vpop.f32.mrf.mxu0 }
 0x136   :  { %v568_v30 = vpop.f32.mrf.mxu1  ;;  %v528_v31 = vadd.f32 %v527_v29, %v152_v27 }
 0x137   :  { %v529_v32 = vpop.f32.mrf.mxu0 }
 0x138   :  { %v570_v33 = vpop.f32.mrf.mxu1  ;;  %v569_v34 = vadd.f32 %v568_v30, %v528_v31  ;;  %v530_v35 = vadd.f32 %v529_v32, %v156_v28 }
 0x139   :  { %v531_v36 = vpop.f32.mrf.mxu0 }
 0x13a   :  { %v572_v37 = vpop.f32.mrf.mxu1  ;;  %v577_v38 = vand.u32 2147483647, %v569_v34  ;;  %v571_v39 = vadd.f32 %v570_v33, %v530_v35  ;;  %v575_v61 = vmax.f32 %v569_v34, 0.0 }
 0x13b   :  { %v532_v40 = vpop.f32.mrf.mxu0 }
 0x13c   :  { %v573_v41 = vpop.f32.mrf.mxu1  ;;  %v579_v42 = vsub.f32 0.0, %v577_v38  ;;  %v578_v43 = vand.u32 2147483647, %v571_v39  ;;  %v576_v1 = vmax.f32 %v571_v39, 0.0  ;;  %v1012_v38 = vld [vmem:[%s1408_s6] ss:$0 sm:$0xff] }
 0x13e   :  { %v581_v44 = vmul.f32 1.442695, %v579_v42  ;;  %v580_v45 = vsub.f32 0.0, %v578_v43 }
 0x140   :  { %1207 = vpow2.f32 %v581_v44  ;;  %v583_v46 = vmul.f32 1.442695, %v580_v45 }
 0x142   :  { %1209 = vpow2.f32 %v583_v46 }
 0x14d   :  { %v1208_v47 = vpop.eup %1207 }
 0x14e   :  { %v585_v48 = vadd.f32 1.0, %v1208_v47  ;;  %v588_v51 = vmul.f32 -0.5, %v1208_v47  ;;  %v591_v54 = vand.u32 2147483647, %v1208_v47 }
 0x14f   :  { %v1210_v49 = vpop.eup %1209 }
 0x150   :  { %1211 = vlog2.f32 %v585_v48  ;;  %v594_v50 = vadd.f32 1.0, %v1210_v49  ;;  %v597_v52 = vmul.f32 -0.5, %v1210_v49  ;;  %v589_v53 = vadd.f32 1.0, %v588_v51 }
 0x151   :  { %v600_v57 = vand.u32 2147483647, %v1210_v49  ;;  %vm592_vm0 = vcmp.lt.f32.partialorder %v591_v54, 0.0004427343 }
 0x152   :  { %1213 = vlog2.f32 %v594_v50  ;;  %v598_v55 = vadd.f32 1.0, %v597_v52  ;;  %v590_v59 = vmul.f32 %v1208_v47, %v589_v53 }
 0x153   :  { %vm601_vm1 = vcmp.lt.f32.partialorder %v600_v57, 0.0004427343 }
 0x154   :  { %v599_v0 = vmul.f32 %v1210_v49, %v598_v55 }
 0x15d   :  { %v1212_v56 = vpop.eup %1211 }
 0x15e   :  { %v587_v58 = vmul.f32 0.6931472, %v1212_v56 }
 0x15f   :  { %v1214_v60 = vpop.eup %1213 }
 0x160   :  { %v593_v62 = vsel %vm592_vm0, %v590_v59, %v587_v58  ;;  %v596_v63 = vmul.f32 0.6931472, %v1214_v60 }
 0x161   :  { %v603_v2 = vadd.f32 %v593_v62, %v575_v61 }
 0x162   :  { %v602_v3 = vsel %vm601_vm1, %v599_v0, %v596_v63 }
 0x163   :  { %v604_v4 = vadd.f32 %v602_v3, %v576_v1  ;;  %v605_v6 = vpack.c.bf16 %v603_v2, %v603_v2 }
 0x165   :  { %v606_v5 = vpack.c.bf16 %v604_v4, %v604_v4 }
 0x167   :  { %774 = vmatprep.mubr.bf16.mxu0 %v606_v5 }
 0x168   :  { %775 = vmatmul.mubr.bf16.vlgmr.msra.gmra.mxu0 %v605_v6 }
 0x228   :  { %v1037_v16 = vpop.f32.mrf.mxu0 }
 0x22a   :  { %v1038_v18 = vpop.f32.mrf.mxu0 }
 0x22b   :  { %v1039_v19 = vadd.f32 %v1038_v18, %v1037_v16 }
 0x22c   :  { %v1040_v20 = vpop.f32.mrf.mxu0 }
 0x22d   :  { %v777_v21 = vadd.f32 %v1039_v19, %v995_v17 }
 0x22e   :  { %v1041_v22 = vpop.f32.mrf.mxu0 }
 0x22f   :  { %v783_v23 = vand.u32 2147483647, %v777_v21  ;;  %v782_v34 = vmax.f32 %v777_v21, 0.0 }
 0x231   :  { %v784_v24 = vsub.f32 0.0, %v783_v23 }
 0x233   :  { %v785_v25 = vmul.f32 1.442695, %v784_v24 }
 0x235   :  { %1215 = vpow2.f32 %v785_v25 }
 0x242   :  { %v1216_v26 = vpop.eup %1215 }
 0x243   :  { %v787_v27 = vadd.f32 1.0, %v1216_v26  ;;  %v790_v28 = vmul.f32 -0.5, %v1216_v26  ;;  %v793_v30 = vand.u32 2147483647, %v1216_v26 }
 0x245   :  { %1217 = vlog2.f32 %v787_v27  ;;  %v791_v29 = vadd.f32 1.0, %v790_v28  ;;  %vm794_vm3 = vcmp.lt.f32.partialorder %v793_v30, 0.0004427343 }
 0x247   :  { %v792_v33 = vmul.f32 %v1216_v26, %v791_v29 }
 0x252   :  { %v1218_v31 = vpop.eup %1217 }
 0x253   :  { %v789_v32 = vmul.f32 0.6931472, %v1218_v31 }
 0x255   :  { %v795_v35 = vsel %vm794_vm3, %v792_v33, %v789_v32 }
 0x256   :  { %v796_v36 = vadd.f32 %v795_v35, %v782_v34 }
 0x258   :  { %v797_v37 = vpack.c.bf16 %v796_v36, %v796_v36 }
 0x25a   :  { %1069 = vmatmul.mubr.bf16.vlgmr.msra.gmra.mxu1 %v797_v37 }
 0x31a   :  { %v903_v39 = vpop.f32.mrf.mxu1 }
 0x31b   :  { %v904_v40 = vadd.f32 %v1012_v38, %v903_v39 }
 0x31c   :  { %v1070_v41 = vpop.f32.mrf.mxu1 }
 0x31d   :  { %909 = vst [vmem:[#allocation10] sm:$0xff] %v904_v40 }
 0x31e   :  { %v906_v42 = vpop.f32.mrf.mxu1 }
 0x31f   :  { %1310 = shalt.err (!%p1307_p10)
}
 0x320   :  { %919 = dma.vmem_to_hbm [thread:$0]  %s917_s26, 128, %s1409_s7, [#allocation4]   ;;  %v1071_v43 = vpop.f32.mrf.mxu1 }
 0x321   :  { %1325 = dma.done.wait [#allocation4], 128  }
 0x322   :  { %1326 = vsyncadd [#allocation4], 4294967168 }
 0x323   :  { %923 = vsyncpa [#allocation3], 1 }
 0x324   :  { %924 = vsyncpa [#allocation6], 1 }
 0x325   :  { %925 = vsyncpa [#allocation9], 1 }
 0x326   :  { %926 = vsyncpa [#allocation4], 1 }

// kernel: tpu_custom_call.1
= control target key start
LH: loop header
LB: loop body
LE: loop exit
PB: predicated region body
PF: predicated region fallthrough
CT: control target
= control target key end

     0   :  { %12 = vsyncpa [#allocation3], 0  ;;  %s1402_s0 = inlined_call_operand.hbm [shape: bf16[8,512], index: 0, kind: input, shape index: {}]   ;;  %s1403_s1 = inlined_call_operand.hbm [shape: bf16[512,256], index: 1, kind: input, shape index: {}]   ;;  %s1404_s2 = inlined_call_operand.vmem [shape: f32[1,256], index: 2, kind: input, shape index: {}]   ;;  %s1405_s3 = inlined_call_operand.hbm [shape: bf16[256,128], index: 3, kind: input, shape index: {}]   ;;  %s1406_s4 = inlined_call_operand.vmem [shape: f32[1,128], index: 4, kind: input, shape index: {}]   ;;  %s1407_s5 = inlined_call_operand.hbm [shape: bf16[128,128], index: 5, kind: input, shape index: {}]   ;;  %s1408_s6 = inlined_call_operand.vmem [shape: f32[1,128], index: 6, kind: input, shape index: {}]   ;;  %s1409_s7 = inlined_call_operand.hbm [shape: f32[8,128], index: 7, kind: output, shape index: {}]  }
   0x1   :  { %13 = vsyncpa [#allocation6], 0 }
   0x2   :  { %14 = vsyncpa [#allocation9], 0 }
   0x3   :  { %15 = vsyncpa [#allocation4], 0  ;;  %s1327_s24 = smov [#allocation5]  }
   0x4   :  { %s31_s25 = sshll.u32 %s1327_s24, 4  ;;  %s32_s25 = int_to_ptr.vmem [resolvable:$true] %s31_s25 }
   0x5   :  { %s1227_s26 = scalar_lea.vmem %s32_s25, 8192  ;;  %p1232_p1 = scmp.lt.s32.totalorder %s32_s25, %s32_s25 }
   0x6   :  { %p1228_p0 = scmp.ne.s32.totalorder %s32_s25, %s1227_s26  ;;  %p1233_p2 = scmp.lt.s32.totalorder %s1227_s26, %s1227_s26 }
   0x8   :  { %p1234_p3 = por %p1233_p2, %p1232_p1 }
   0xa   :  { %p1235_p4 = pnand %p1234_p3, %p1228_p0 }
   0xc   :  { %1238 = shalt.err (!%p1235_p4)
}
   0xd   :  { %s1328_s27 = smov 128   ;;  %s1329_s28 = smov 8  }
   0xe   :  { %37 = dma.hbm_to_vmem [thread:$0]  %s1403_s1, 8192, %s32_s25, [#allocation6], %s1328_s27, %s1328_s27, %s1329_s28  }
   0xf   :  { %s1330_s8 = smov [#allocation2]   ;;  %s1331_s10 = smov [#allocation7]  }
  0x10   :  { %s22_s9 = sshll.u32 %s1330_s8, 4  ;;  %s45_s11 = sshll.u32 %s1331_s10, 4  ;;  %s23_s9 = int_to_ptr.vmem [resolvable:$true] %s22_s9  ;;  %s46_s11 = int_to_ptr.vmem [resolvable:$true] %s45_s11 }
  0x11   :  { %s1247_s12 = scalar_lea.vmem %s23_s9, 256  ;;  %p1252_p6 = scmp.lt.s32.totalorder %s23_s9, %s23_s9 }
  0x12   :  { %p1248_p5 = scmp.ne.s32.totalorder %s23_s9, %s1247_s12  ;;  %p1253_p7 = scmp.lt.s32.totalorder %s1247_s12, %s1247_s12 }
  0x14   :  { %p1254_p8 = por %p1253_p7, %p1252_p6 }
  0x16   :  { %p1255_p9 = pnand %p1254_p8, %p1248_p5 }
  0x18   :  { %1258 = shalt.err (!%p1255_p9)
}
  0x19   :  { %25 = dma.hbm_to_vmem [thread:$0]  %s1402_s0, 256, %s23_s9, [#allocation3]  }
  0x1a   :  { %s1267_s15 = scalar_lea.vmem %s46_s11, 2048  ;;  %p1272_p11 = scmp.lt.s32.totalorder %s46_s11, %s46_s11 }
  0x1b   :  { %p1268_p10 = scmp.ne.s32.totalorder %s46_s11, %s1267_s15  ;;  %p1273_p12 = scmp.lt.s32.totalorder %s1267_s15, %s1267_s15 }
  0x1d   :  { %p1274_p13 = por %p1273_p12, %p1272_p11 }
  0x1f   :  { %p1275_p0 = pnand %p1274_p13, %p1268_p10 }
  0x21   :  { %1278 = shalt.err (!%p1275_p0)
}
  0x22   :  { %s1332_s1 = smov 64   ;;  %s1333_s16 = smov 4  }
  0x23   :  { %51 = dma.hbm_to_vmem [thread:$0]  %s1405_s3, 2048, %s46_s11, [#allocation6], %s1332_s1, %s1332_s1, %s1333_s16  }
  0x24   :  { %s1334_s19 = smov [#allocation8]  }
  0x25   :  { %s59_s20 = sshll.u32 %s1334_s19, 4  ;;  %s60_s20 = int_to_ptr.vmem [resolvable:$true] %s59_s20 }
  0x26   :  { %s1287_s21 = scalar_lea.vmem %s60_s20, 1024  ;;  %p1292_p2 = scmp.lt.s32.totalorder %s60_s20, %s60_s20 }
  0x27   :  { %p1288_p1 = scmp.ne.s32.totalorder %s60_s20, %s1287_s21  ;;  %p1293_p3 = scmp.lt.s32.totalorder %s1287_s21, %s1287_s21 }
  0x29   :  { %p1294_p4 = por %p1293_p3, %p1292_p2 }
  0x2b   :  { %p1295_p5 = pnand %p1294_p4, %p1288_p1 }
  0x2d   :  { %1298 = shalt.err (!%p1295_p5)
}
  0x2e   :  { %65 = dma.hbm_to_vmem [thread:$0]  %s1407_s5, 1024, %s60_s20, [#allocation9], %s1332_s1, %s1332_s1, %s1333_s16  }
  0x2f   :  { %1319 = dma.done.wait [#allocation3], 256  }
  0x30   :  { %1320 = vsyncadd [#allocation3], 4294967040 }
  0x31   :  { %1321 = dma.done.wait [#allocation6], 10240  }
  0x32   :  { %1322 = vsyncadd [#allocation6], 4294957056 }
  0x33   :  { %1323 = dma.done.wait [#allocation9], 1024  }
  0x34   :  { %1324 = vsyncadd [#allocation9], 4294966272  ;;  %v1083_v0 = vld [vmem:[#allocation5 + $0x74] ss:$8 sps:$4 sm:$0xff]   ;;  %v1087_v2 = vld [vmem:[#allocation5 + $0x70] ss:$8 sps:$4 sm:$0xff]  }
  0x35   :  { %v1085_v1 = vld [vmem:[#allocation5 + $0x174] ss:$8 sps:$4 sm:$0xff]   ;;  %493 = vmatprep.subr.bf16.mxu0 %v1083_v0  ;;  %v1088_v3 = vld [vmem:[#allocation5 + $0x170] ss:$8 sps:$4 sm:$0xff]   ;;  %v1089_v4 = vld [vmem:[#allocation5 + $0x64] ss:$8 sps:$4 sm:$0xff]  }
  0x36   :  { %534 = vmatprep.subr.bf16.mxu1 %v1085_v1  ;;  %494 = vmatpush1.bf16.msra.mxu0 %v1087_v2  ;;  %v1091_v5 = vld [vmem:[#allocation5 + $0x164] ss:$8 sps:$4 sm:$0xff]   ;;  %v1093_v6 = vld [vmem:[#allocation5 + $0x60] ss:$8 sps:$4 sm:$0xff]   ;;  %v1095_v8 = vld [vmem:[#allocation5 + $0x54] ss:$8 sps:$4 sm:$0xff]  }
  0x37   :  { %535 = vmatpush1.bf16.msra.mxu1 %v1088_v3  ;;  %495 = vmatprep.subr.bf16.mxu0 %v1089_v4  ;;  %v1094_v7 = vld [vmem:[#allocation5 + $0x160] ss:$8 sps:$4 sm:$0xff]   ;;  %v1097_v9 = vld [vmem:[#allocation5 + $0x154] ss:$8 sps:$4 sm:$0xff]   ;;  %v1099_v10 = vld [vmem:[#allocation5 + $0x50] ss:$8 sps:$4 sm:$0xff]  }
  0x38   :  { %536 = vmatprep.subr.bf16.mxu1 %v1091_v5  ;;  %v1100_v11 = vld [vmem:[#allocation5 + $0x150] ss:$8 sps:$4 sm:$0xff]   ;;  %v1101_v12 = vld [vmem:[#allocation5 + $0x44] ss:$8 sps:$4 sm:$0xff]   ;;  %v1105_v14 = vld [vmem:[#allocation5 + $0x40] ss:$8 sps:$4 sm:$0xff]  }
  0x39   :  { %v1103_v13 = vld [vmem:[#allocation5 + $0x144] ss:$8 sps:$4 sm:$0xff]   ;;  %v1106_v15 = vld [vmem:[#allocation5 + $0x140] ss:$8 sps:$4 sm:$0xff]   ;;  %v1107_v16 = vld [vmem:[#allocation5 + $0x34] ss:$8 sps:$4 sm:$0xff]  }
  0x3a   :  { %496 = vmatpush1.bf16.msra.mxu0 %v1093_v6  ;;  %v1109_v17 = vld [vmem:[#allocation5 + $0x134] ss:$8 sps:$4 sm:$0xff]   ;;  %v1111_v18 = vld [vmem:[#allocation5 + $0x30] ss:$8 sps:$4 sm:$0xff]   ;;  %v1113_v20 = vld [vmem:[#allocation5 + $0x24] ss:$8 sps:$4 sm:$0xff]  }
  0x3b   :  { %537 = vmatpush1.bf16.msra.mxu1 %v1094_v7  ;;  %497 = vmatprep.subr.bf16.mxu0 %v1095_v8  ;;  %v1112_v19 = vld [vmem:[#allocation5 + $0x130] ss:$8 sps:$4 sm:$0xff]   ;;  %v1115_v21 = vld [vmem:[#allocation5 + $0x124] ss:$8 sps:$4 sm:$0xff]   ;;  %v1117_v22 = vld [vmem:[#allocation5 + $0x20] ss:$8 sps:$4 sm:$0xff]  }
  0x3c   :  { %538 = vmatprep.subr.bf16.mxu1 %v1097_v9  ;;  %v1118_v23 = vld [vmem:[#allocation5 + $0x120] ss:$8 sps:$4 sm:$0xff]   ;;  %v1119_v24 = vld [vmem:[#allocation5 + $0x14] ss:$8 sps:$4 sm:$0xff]   ;;  %v1123_v26 = vld [vmem:[#allocation5 + $0x10] ss:$8 sps:$4 sm:$0xff]  }
  0x3d   :  { %v1121_v25 = vld [vmem:[#allocation5 + $0x114] ss:$8 sps:$4 sm:$0xff]   ;;  %v1124_v27 = vld [vmem:[#allocation5 + $0x110] ss:$8 sps:$4 sm:$0xff]   ;;  %v1125_v28 = vld [vmem:[#allocation5 + $0x4] ss:$8 sps:$4 sm:$0xff]  }
  0x3e   :  { %498 = vmatpush1.bf16.msra.mxu0 %v1099_v10  ;;  %v1127_v29 = vld [vmem:[#allocation5 + $0x104] ss:$8 sps:$4 sm:$0xff]   ;;  %v1129_v30 = vld [vmem:[#allocation5] ss:$8 sps:$4 sm:$0xff]   ;;  %v1131_v32 = vld [vmem:[#allocation5 + $0xf4] ss:$8 sps:$4 sm:$0xff]  }
  0x3f   :  { %539 = vmatpush1.bf16.msra.mxu1 %v1100_v11  ;;  %499 = vmatprep.subr.bf16.mxu0 %v1101_v12  ;;  %v1130_v31 = vld [vmem:[#allocation5 + $0x100] ss:$8 sps:$4 sm:$0xff]   ;;  %v1133_v33 = vld [vmem:[#allocation5 + $0x1f4] ss:$8 sps:$4 sm:$0xff]   ;;  %v1135_v34 = vld [vmem:[#allocation5 + $0xf0] ss:$8 sps:$4 sm:$0xff]  }
  0x40   :  { %540 = vmatprep.subr.bf16.mxu1 %v1103_v13  ;;  %v1136_v35 = vld [vmem:[#allocation5 + $0x1f0] ss:$8 sps:$4 sm:$0xff]   ;;  %v1137_v36 = vld [vmem:[#allocation5 + $0xe4] ss:$8 sps:$4 sm:$0xff]   ;;  %v1141_v38 = vld [vmem:[#allocation5 + $0xe0] ss:$8 sps:$4 sm:$0xff]  }
  0x41   :  { %v1139_v37 = vld [vmem:[#allocation5 + $0x1e4] ss:$8 sps:$4 sm:$0xff]   ;;  %v1142_v39 = vld [vmem:[#allocation5 + $0x1e0] ss:$8 sps:$4 sm:$0xff]   ;;  %v1143_v40 = vld [vmem:[#allocation5 + $0xd4] ss:$8 sps:$4 sm:$0xff]  }
  0x42   :  { %500 = vmatpush1.bf16.msra.mxu0 %v1105_v14  ;;  %v1145_v41 = vld [vmem:[#allocation5 + $0x1d4] ss:$8 sps:$4 sm:$0xff]   ;;  %v1147_v42 = vld [vmem:[#allocation5 + $0xd0] ss:$8 sps:$4 sm:$0xff]   ;;  %v1149_v44 = vld [vmem:[#allocation5 + $0xc4] ss:$8 sps:$4 sm:$0xff]  }
  0x43   :  { %541 = vmatpush1.bf16.msra.mxu1 %v1106_v15  ;;  %501 = vmatprep.subr.bf16.mxu0 %v1107_v16  ;;  %v1148_v43 = vld [vmem:[#allocation5 + $0x1d0] ss:$8 sps:$4 sm:$0xff]   ;;  %v1151_v45 = vld [vmem:[#allocation5 + $0x1c4] ss:$8 sps:$4 sm:$0xff]   ;;  %v1153_v46 = vld [vmem:[#allocation5 + $0xc0] ss:$8 sps:$4 sm:$0xff]  }
  0x44   :  { %542 = vmatprep.subr.bf16.mxu1 %v1109_v17  ;;  %v1154_v47 = vld [vmem:[#allocation5 + $0x1c0] ss:$8 sps:$4 sm:$0xff]   ;;  %v81_v48 = vld [vmem:[#allocation2] sm:$0xff]  ;;  %v82_v52 = vld [vmem:[#allocation2 + $0x8] sm:$0xff]  ;;  %vm1336_vm2 = vmmov 0   ;;  %s1337_s25 = smov [#allocation10]  }
  0x45   :  { %v1155_v49 = vld [vmem:[#allocation5 + $0xb4] ss:$8 sps:$4 sm:$0xff]   ;;  %v928_v51 = vcombine.high %v81_v48, %v81_v48  ;;  %v930_v53 = vcombine.high %v82_v52, %v82_v52  ;;  %v1159_v54 = vld [vmem:[#allocation5 + $0xb0] ss:$8 sps:$4 sm:$0xff]   ;;  %v1161_v56 = vld [vmem:[#allocation5 + $0xa4] ss:$8 sps:$4 sm:$0xff]   ;;  %v927_v4 = vcombine.low %v81_v48, %v81_v48  ;;  %v929_v5 = vcombine.low %v82_v52, %v82_v52 }
  0x46   :  { %502 = vmatpush1.bf16.msra.mxu0 %v1111_v18  ;;  %v1157_v50 = vld [vmem:[#allocation5 + $0x1b4] ss:$8 sps:$4 sm:$0xff]   ;;  %v1160_v55 = vld [vmem:[#allocation5 + $0x1b0] ss:$8 sps:$4 sm:$0xff]   ;;  %v1163_v57 = vld [vmem:[#allocation5 + $0x1a4] ss:$8 sps:$4 sm:$0xff]  }
  0x47   :  { %543 = vmatpush1.bf16.msra.mxu1 %v1112_v19  ;;  %503 = vmatprep.subr.bf16.mxu0 %v1113_v20  ;;  %v1165_v58 = vld [vmem:[#allocation5 + $0xa0] ss:$8 sps:$4 sm:$0xff]   ;;  %v1167_v60 = vld [vmem:[#allocation5 + $0x94] ss:$8 sps:$4 sm:$0xff]   ;;  %v1171_v62 = vld [vmem:[#allocation5 + $0x90] ss:$8 sps:$4 sm:$0xff]  }
  0x48   :  { %544 = vmatprep.subr.bf16.mxu1 %v1115_v21  ;;  %525 = vmatprep.mubr.bf16.mxu0 %v928_v51  ;;  %v1166_v59 = vld [vmem:[#allocation5 + $0x1a0] ss:$8 sps:$4 sm:$0xff]   ;;  %v1169_v61 = vld [vmem:[#allocation5 + $0x194] ss:$8 sps:$4 sm:$0xff]   ;;  %v1172_v63 = vld [vmem:[#allocation5 + $0x190] ss:$8 sps:$4 sm:$0xff]  }
  0x49   :  { %566 = vmatprep.mubr.bf16.mxu1 %v930_v53  ;;  %v1173_v0 = vld [vmem:[#allocation5 + $0x84] ss:$8 sps:$4 sm:$0xff]   ;;  %v1177_v2 = vld [vmem:[#allocation5 + $0x80] ss:$8 sps:$4 sm:$0xff]   ;;  %v1183_v6 = vld [vmem:[#allocation7 + $0x78] sm:$0xff]   ;;  %s916_s26 = sshll.u32 %s1337_s25, 4  ;;  %s917_s26 = int_to_ptr.vmem [resolvable:$true] %s916_s26 }
  0x4a   :  { %504 = vmatpush1.bf16.msra.mxu0 %v1117_v22  ;;  %v1175_v1 = vld [vmem:[#allocation5 + $0x184] ss:$8 sps:$4 sm:$0xff]   ;;  %v1178_v3 = vld [vmem:[#allocation5 + $0x180] ss:$8 sps:$4 sm:$0xff]   ;;  %v1184_v7 = vld [vmem:[#allocation7 + $0x38] sm:$0xff]   ;;  %v149_v22 = vlaneseq  ;;  %s1299_s27 = scalar_lea.vmem %s917_s26, 128  ;;  %p1304_p7 = scmp.lt.s32.totalorder %s917_s26, %s917_s26 }
  0x4b   :  { %545 = vmatpush1.bf16.msra.mxu1 %v1118_v23  ;;  %505 = vmatprep.subr.bf16.mxu0 %v1119_v24  ;;  %v1185_v8 = vld [vmem:[#allocation7 + $0x70] sm:$0xff]   ;;  %v1187_v10 = vld [vmem:[#allocation7 + $0x68] sm:$0xff]   ;;  %v1189_v12 = vld [vmem:[#allocation7 + $0x60] sm:$0xff]   ;;  %p1300_p6 = scmp.ne.s32.totalorder %s917_s26, %s1299_s27  ;;  %p1305_p8 = scmp.lt.s32.totalorder %s1299_s27, %s1299_s27 }
  0x4c   :  { %546 = vmatprep.subr.bf16.mxu1 %v1121_v25  ;;  %v1186_v9 = vld [vmem:[#allocation7 + $0x30] sm:$0xff]   ;;  %v1188_v11 = vld [vmem:[#allocation7 + $0x28] sm:$0xff]   ;;  %v1190_v13 = vld [vmem:[#allocation7 + $0x20] sm:$0xff]   ;;  %v150_v23 = vshrl.u32 %v149_v22, 7 }
  0x4d   :  { %v1191_v14 = vld [vmem:[#allocation7 + $0x58] sm:$0xff]   ;;  %v1193_v16 = vld [vmem:[#allocation7 + $0x50] sm:$0xff]   ;;  %v1195_v18 = vld [vmem:[#allocation7 + $0x48] sm:$0xff]   ;;  %p1306_p9 = por %p1305_p8, %p1304_p7 }
  0x4e   :  { %506 = vmatpush1.bf16.msra.mxu0 %v1123_v26  ;;  %v1192_v15 = vld [vmem:[#allocation7 + $0x18] sm:$0xff]   ;;  %v1194_v17 = vld [vmem:[#allocation7 + $0x10] sm:$0xff]   ;;  %v1196_v19 = vld [vmem:[#allocation7 + $0x8] sm:$0xff]   ;;  %v151_v24 = vsub.s32 0, %v150_v23  ;;  %v155_v26 = vsub.s32 1, %v150_v23 }
  0x4f   :  { %547 = vmatpush1.bf16.msra.mxu1 %v1124_v27  ;;  %507 = vmatprep.subr.bf16.mxu0 %v1125_v28  ;;  %v1197_v20 = vld [vmem:[#allocation7 + $0x40] sm:$0xff]   ;;  %v147_v25 = vld [vmem:[%s1404_s2] sm:$0x3]  ;;  %p1307_p10 = pnand %p1306_p9, %p1300_p6 }
  0x50   :  { %548 = vmatprep.subr.bf16.mxu1 %v1127_v29  ;;  %v1198_v21 = vld [vmem:[#allocation7] sm:$0xff]   ;;  %v152_v27 = vrot.slane %v147_v25, %v151_v24  ;;  %v156_v28 = vrot.slane %v147_v25, %v155_v26 }
  0x52   :  { %508 = vmatpush1.bf16.msra.mxu0 %v1129_v30 }
  0x53   :  { %549 = vmatpush1.bf16.msra.mxu1 %v1130_v31  ;;  %509 = vmatprep.subr.bf16.mxu0 %v1131_v32 }
  0x54   :  { %550 = vmatprep.subr.bf16.mxu1 %v1133_v33 }
  0x56   :  { %510 = vmatpush2.bf16.msra.mxu0 %v1135_v34 }
  0x57   :  { %551 = vmatpush2.bf16.msra.mxu1 %v1136_v35  ;;  %511 = vmatprep.subr.bf16.mxu0 %v1137_v36 }
  0x58   :  { %552 = vmatprep.subr.bf16.mxu1 %v1139_v37 }
  0x5a   :  { %512 = vmatpush2.bf16.msra.mxu0 %v1141_v38 }
  0x5b   :  { %553 = vmatpush2.bf16.msra.mxu1 %v1142_v39  ;;  %513 = vmatprep.subr.bf16.mxu0 %v1143_v40 }
  0x5c   :  { %554 = vmatprep.subr.bf16.mxu1 %v1145_v41 }
  0x5e   :  { %514 = vmatpush2.bf16.msra.mxu0 %v1147_v42 }
  0x5f   :  { %555 = vmatpush2.bf16.msra.mxu1 %v1148_v43  ;;  %515 = vmatprep.subr.bf16.mxu0 %v1149_v44 }
  0x60   :  { %556 = vmatprep.subr.bf16.mxu1 %v1151_v45 }
  0x62   :  { %516 = vmatpush2.bf16.msra.mxu0 %v1153_v46 }
  0x63   :  { %557 = vmatpush2.bf16.msra.mxu1 %v1154_v47  ;;  %517 = vmatprep.subr.bf16.mxu0 %v1155_v49 }
  0x64   :  { %558 = vmatprep.subr.bf16.mxu1 %v1157_v50 }
  0x66   :  { %518 = vmatpush2.bf16.msra.mxu0 %v1159_v54 }
  0x67   :  { %559 = vmatpush2.bf16.msra.mxu1 %v1160_v55  ;;  %519 = vmatprep.subr.bf16.mxu0 %v1161_v56 }
  0x68   :  { %560 = vmatprep.subr.bf16.mxu1 %v1163_v57 }
  0x6a   :  { %520 = vmatpush2.bf16.msra.mxu0 %v1165_v58 }
  0x6b   :  { %561 = vmatpush2.bf16.msra.mxu1 %v1166_v59  ;;  %521 = vmatprep.subr.bf16.mxu0 %v1167_v60 }
  0x6c   :  { %562 = vmatprep.subr.bf16.mxu1 %v1169_v61 }
  0x6e   :  { %522 = vmatpush2.bf16.msra.mxu0 %v1171_v62 }
  0x6f   :  { %563 = vmatpush2.bf16.msra.mxu1 %v1172_v63  ;;  %523 = vmatprep.subr.bf16.mxu0 %v1173_v0 }
  0x70   :  { %564 = vmatprep.subr.bf16.mxu1 %v1175_v1 }
  0x72   :  { %524 = vmatpush2.bf16.msra.mxu0 %v1177_v2 }
  0x73   :  { %565 = vmatpush2.bf16.msra.mxu1 %v1178_v3  ;;  %1021 = vmatprep.subr.bf16.mxu0 %v1183_v6 }
  0x75   :  { %526 = vmatmul.mubr.bf16.vlgmr.msra.gmra.mxu0 %v927_v4 }
  0x76   :  { %567 = vmatmul.mubr.bf16.vlgmr.msra.gmra.mxu1 %v929_v5  ;;  %1022 = vmatpush3.bf16.msra.mxu0 %v1184_v7  ;;  %v1199_v7 = vld [vmem:[#allocation8 + $0x38] sm:$0xff]  }
  0x77   :  { %1023 = vmatprep.subr.bf16.mxu0 %v1185_v8  ;;  %v1335_v8 = vmov 0.0  }
  0x78   :  { %1052 = vmatprep.subr.bf16.mxu1 %v1335_v8  ;;  %1068 = vmatprep.mubr.msk.bf16.mxu1 %vm1336_vm2, %v1335_v8 }
  0x79   :  { %1053 = vmatpush3.bf16.msra.mxu1 %v1199_v7 }
  0x7a   :  { %1024 = vmatpush3.bf16.msra.mxu0 %v1186_v9  ;;  %1054 = vmatprep.subr.bf16.mxu1 %v1335_v8  ;;  %v1200_v9 = vld [vmem:[#allocation8 + $0x30] sm:$0xff]  }
  0x7b   :  { %1025 = vmatprep.subr.bf16.mxu0 %v1187_v10  ;;  %v1201_v10 = vld [vmem:[#allocation8 + $0x28] sm:$0xff]  }
  0x7d   :  { %1055 = vmatpush3.bf16.msra.mxu1 %v1200_v9 }
  0x7e   :  { %1026 = vmatpush3.bf16.msra.mxu0 %v1188_v11  ;;  %1056 = vmatprep.subr.bf16.mxu1 %v1335_v8  ;;  %v1202_v11 = vld [vmem:[#allocation8 + $0x20] sm:$0xff]  }
  0x7f   :  { %1027 = vmatprep.subr.bf16.mxu0 %v1189_v12  ;;  %v1203_v12 = vld [vmem:[#allocation8 + $0x18] sm:$0xff]  }
  0x81   :  { %1057 = vmatpush3.bf16.msra.mxu1 %v1201_v10 }
  0x82   :  { %1028 = vmatpush3.bf16.msra.mxu0 %v1190_v13  ;;  %1058 = vmatprep.subr.bf16.mxu1 %v1335_v8  ;;  %v1204_v13 = vld [vmem:[#allocation8 + $0x10] sm:$0xff]  }
  0x83   :  { %1029 = vmatprep.subr.bf16.mxu0 %v1191_v14  ;;  %v1205_v14 = vld [vmem:[#allocation8 + $0x8] sm:$0xff]  }
  0x85   :  { %1059 = vmatpush3.bf16.msra.mxu1 %v1202_v11 }
  0x86   :  { %1030 = vmatpush3.bf16.msra.mxu0 %v1192_v15  ;;  %1060 = vmatprep.subr.bf16.mxu1 %v1335_v8  ;;  %v1206_v15 = vld [vmem:[#allocation8] sm:$0xff]  }
  0x87   :  { %1031 = vmatprep.subr.bf16.mxu0 %v1193_v16 }
  0x89   :  { %1061 = vmatpush3.bf16.msra.mxu1 %v1203_v12 }
  0x8a   :  { %1032 = vmatpush3.bf16.msra.mxu0 %v1194_v17  ;;  %1062 = vmatprep.subr.bf16.mxu1 %v1335_v8  ;;  %v995_v17 = vld [vmem:[%s1406_s4] ss:$0 sm:$0xff] }
  0x8b   :  { %1033 = vmatprep.subr.bf16.mxu0 %v1195_v18 }
  0x8d   :  { %1063 = vmatpush3.bf16.msra.mxu1 %v1204_v13 }
  0x8e   :  { %1034 = vmatpush3.bf16.msra.mxu0 %v1196_v19  ;;  %1064 = vmatprep.subr.bf16.mxu1 %v1335_v8 }
  0x8f   :  { %1035 = vmatprep.subr.bf16.mxu0 %v1197_v20 }
  0x91   :  { %1065 = vmatpush3.bf16.msra.mxu1 %v1205_v14 }
  0x92   :  { %1036 = vmatpush3.bf16.msra.mxu0 %v1198_v21  ;;  %1066 = vmatprep.subr.bf16.mxu1 %v1335_v8 }
  0x95   :  { %1067 = vmatpush3.bf16.msra.mxu1 %v1206_v15 }
 0x135   :  { %v527_v29 = vpop.f32.mrf.mxu0 }
 0x136   :  { %v568_v30 = vpop.f32.mrf.mxu1  ;;  %v528_v31 = vadd.f32 %v527_v29, %v152_v27 }
 0x137   :  { %v529_v32 = vpop.f32.mrf.mxu0 }
 0x138   :  { %v570_v33 = vpop.f32.mrf.mxu1  ;;  %v569_v34 = vadd.f32 %v568_v30, %v528_v31  ;;  %v530_v35 = vadd.f32 %v529_v32, %v156_v28 }
 0x139   :  { %v531_v36 = vpop.f32.mrf.mxu0 }
 0x13a   :  { %v572_v37 = vpop.f32.mrf.mxu1  ;;  %v577_v38 = vand.u32 2147483647, %v569_v34  ;;  %v571_v39 = vadd.f32 %v570_v33, %v530_v35  ;;  %v575_v61 = vmax.f32 %v569_v34, 0.0 }
 0x13b   :  { %v532_v40 = vpop.f32.mrf.mxu0 }
 0x13c   :  { %v573_v41 = vpop.f32.mrf.mxu1  ;;  %v579_v42 = vsub.f32 0.0, %v577_v38  ;;  %v578_v43 = vand.u32 2147483647, %v571_v39  ;;  %v576_v1 = vmax.f32 %v571_v39, 0.0  ;;  %v1012_v38 = vld [vmem:[%s1408_s6] ss:$0 sm:$0xff] }
 0x13e   :  { %v581_v44 = vmul.f32 1.442695, %v579_v42  ;;  %v580_v45 = vsub.f32 0.0, %v578_v43 }
 0x140   :  { %1207 = vpow2.f32 %v581_v44  ;;  %v583_v46 = vmul.f32 1.442695, %v580_v45 }
 0x142   :  { %1209 = vpow2.f32 %v583_v46 }
 0x14d   :  { %v1208_v47 = vpop.eup %1207 }
 0x14e   :  { %v585_v48 = vadd.f32 1.0, %v1208_v47  ;;  %v588_v51 = vmul.f32 -0.5, %v1208_v47  ;;  %v591_v54 = vand.u32 2147483647, %v1208_v47 }
 0x14f   :  { %v1210_v49 = vpop.eup %1209 }
 0x150   :  { %1211 = vlog2.f32 %v585_v48  ;;  %v594_v50 = vadd.f32 1.0, %v1210_v49  ;;  %v597_v52 = vmul.f32 -0.5, %v1210_v49  ;;  %v589_v53 = vadd.f32 1.0, %v588_v51 }
 0x151   :  { %v600_v57 = vand.u32 2147483647, %v1210_v49  ;;  %vm592_vm0 = vcmp.lt.f32.partialorder %v591_v54, 0.0004427343 }
 0x152   :  { %1213 = vlog2.f32 %v594_v50  ;;  %v598_v55 = vadd.f32 1.0, %v597_v52  ;;  %v590_v59 = vmul.f32 %v1208_v47, %v589_v53 }
 0x153   :  { %vm601_vm1 = vcmp.lt.f32.partialorder %v600_v57, 0.0004427343 }
 0x154   :  { %v599_v0 = vmul.f32 %v1210_v49, %v598_v55 }
 0x15d   :  { %v1212_v56 = vpop.eup %1211 }
 0x15e   :  { %v587_v58 = vmul.f32 0.6931472, %v1212_v56 }
 0x15f   :  { %v1214_v60 = vpop.eup %1213 }
 0x160   :  { %v593_v62 = vsel %vm592_vm0, %v590_v59, %v587_v58  ;;  %v596_v63 = vmul.f32 0.6931472, %v1214_v60 }
 0x161   :  { %v603_v2 = vadd.f32 %v593_v62, %v575_v61 }
 0x162   :  { %v602_v3 = vsel %vm601_vm1, %v599_v0, %v596_v63 }
 0x163   :  { %v604_v4 = vadd.f32 %v602_v3, %v576_v1  ;;  %v605_v6 = vpack.c.bf16 %v603_v2, %v603_v2 }
 0x165   :  { %v606_v5 = vpack.c.bf16 %v604_v4, %v604_v4 }
 0x167   :  { %774 = vmatprep.mubr.bf16.mxu0 %v606_v5 }
 0x168   :  { %775 = vmatmul.mubr.bf16.vlgmr.msra.gmra.mxu0 %v605_v6 }
 0x228   :  { %v1037_v16 = vpop.f32.mrf.mxu0 }
 0x22a   :  { %v1038_v18 = vpop.f32.mrf.mxu0 }
 0x22b   :  { %v1039_v19 = vadd.f32 %v1038_v18, %v1037_v16 }
 0x22c   :  { %v1040_v20 = vpop.f32.mrf.mxu0 }
 0x22d   :  { %v777_v21 = vadd.f32 %v1039_v19, %v995_v17 }
 0x22e   :  { %v1041_v22 = vpop.f32.mrf.mxu0 }
 0x22f   :  { %v783_v23 = vand.u32 2147483647, %v777_v21  ;;  %v782_v34 = vmax.f32 %v777_v21, 0.0 }
 0x231   :  { %v784_v24 = vsub.f32 0.0, %v783_v23 }
 0x233   :  { %v785_v25 = vmul.f32 1.442695, %v784_v24 }
 0x235   :  { %1215 = vpow2.f32 %v785_v25 }
 0x242   :  { %v1216_v26 = vpop.eup %1215 }
 0x243   :  { %v787_v27 = vadd.f32 1.0, %v1216_v26  ;;  %v790_v28 = vmul.f32 -0.5, %v1216_v26  ;;  %v793_v30 = vand.u32 2147483647, %v1216_v26 }
 0x245   :  { %1217 = vlog2.f32 %v787_v27  ;;  %v791_v29 = vadd.f32 1.0, %v790_v28  ;;  %vm794_vm3 = vcmp.lt.f32.partialorder %v793_v30, 0.0004427343 }
 0x247   :  { %v792_v33 = vmul.f32 %v1216_v26, %v791_v29 }
 0x252   :  { %v1218_v31 = vpop.eup %1217 }
 0x253   :  { %v789_v32 = vmul.f32 0.6931472, %v1218_v31 }
 0x255   :  { %v795_v35 = vsel %vm794_vm3, %v792_v33, %v789_v32 }
 0x256   :  { %v796_v36 = vadd.f32 %v795_v35, %v782_v34 }
 0x258   :  { %v797_v37 = vpack.c.bf16 %v796_v36, %v796_v36 }
 0x25a   :  { %1069 = vmatmul.mubr.bf16.vlgmr.msra.gmra.mxu1 %v797_v37 }
 0x31a   :  { %v903_v39 = vpop.f32.mrf.mxu1 }
 0x31b   :  { %v904_v40 = vadd.f32 %v1012_v38, %v903_v39 }
 0x31c   :  { %v1070_v41 = vpop.f32.mrf.mxu1 }
 0x31d   :  { %909 = vst [vmem:[#allocation10] sm:$0xff] %v904_v40 }
 0x31e   :  { %v906_v42 = vpop.f32.mrf.mxu1 }
 0x31f   :  { %1310 = shalt.err (!%p1307_p10)
}
 0x320   :  { %919 = dma.vmem_to_hbm [thread:$0]  %s917_s26, 128, %s1409_s7, [#allocation4]   ;;  %v1071_v43 = vpop.f32.mrf.mxu1 }
 0x321   :  { %1325 = dma.done.wait [#allocation4], 128  }
 0x322   :  { %1326 = vsyncadd [#allocation4], 4294967168 }
 0x323   :  { %923 = vsyncpa [#allocation3], 1 }
 0x324   :  { %924 = vsyncpa [#allocation6], 1 }
 0x325   :  { %925 = vsyncpa [#allocation9], 1 }
 0x326   :  { %926 = vsyncpa [#allocation4], 1 }

</bundles_post_ra>
